<compile_context>
chip_gen: v6e
topology: v6e:2x2x1
jax: 0.10.0
libtpu: 0.0.40
codegen_flags: <defaults>
</compile_context>

<pallas_src>
import math

import jax
import jax.numpy as jnp
from jax import lax
from jax.experimental import pallas as pl
from jax.experimental.pallas import tpu as pltpu

# ----------------------------- problem sizes --------------------------------
USER_NUM = 8
ITEM_NUM = 8
N = USER_NUM + ITEM_NUM          # total nodes
H = 32                           # latdim / hidden
B = 4                            # bpr batch size
NUM_LAYERS = 2

GAMMA = -0.45
ZETA = 1.05
LAMBDA0 = 1e-4
REG = 1e-5
LOG_RATIO = math.log(-GAMMA / ZETA)


# ----------------------------- kernel helpers --------------------------------
def _sigmoid(x):
    """1/(1+exp(-x)) with the divide routed to the EUP via pl.reciprocal."""
    return pl.reciprocal(1.0 + jnp.exp(-x), approx=False)


def _sumsq(a):
    """Sum of squares of a 2-D array, kept as a (1, 1) tile (keepdims reductions)."""
    return jnp.sum(jnp.sum(a * a, axis=-1, keepdims=True), axis=0, keepdims=True)


# ----------------------------- fused Pallas kernel ---------------------------
def fused_forward_kernel(temp_ref,                      # SMEM (1, 1) temperature
                         x_ref,                         # (N, H) node features
                         r_ref, rt_ref, c_ref,          # (E,N), (N,E), (E,N) one-hot
                         wcat_ref, bcat_ref,            # (L, H, 2H), (L, 1, 2H)
                         wattnb_ref, wattself_ref,      # (L, 1, 2H) zero-padded halves
                         batt_ref,                      # (L, 1, 1)
                         noise_ref,                     # (L, E, 1) hard-concrete noise logits
                         usel_ref, isel_ref, nsel_ref,  # (B, N) one-hot selectors
                         loss_ref):                     # (1, 1) output loss
    temp = temp_ref[0, 0]
    x = x_ref[...]
    R = r_ref[...]
    Rt = rt_ref[...]
    C = c_ref[...]
    E = R.shape[0]

    embeds_sum = x                                   # embedsLst[0] = features.detach()
    l0_acc = jnp.zeros((1, 1), jnp.float32)
    reg_acc = jnp.zeros((1, 1), jnp.float32)

    for l in range(NUM_LAYERS):                      # unrolled at trace time
        wcat = wcat_ref[l]                           # (H, 2H) = [W_nb | W_self]
        bcat = bcat_ref[l]                           # (1, 2H) = [b_nb | b_self]
        watt_nb = wattnb_ref[l]                      # (1, 2H), second half zero
        watt_self = wattself_ref[l]                  # (1, 2H), first half zero
        batt = batt_ref[l]                           # (1, 1)

        # --- per-node attention MLP (hoisted from per-edge), one MXU call ----
        hcat = jnp.dot(x, wcat, preferred_element_type=jnp.float32) + bcat
        hcat = jnp.maximum(hcat, 0.0)                              # (N, 2H)
        s_nb = jnp.sum(hcat * watt_nb, axis=-1, keepdims=True)     # (N, 1)
        s_self = jnp.sum(hcat * watt_self, axis=-1, keepdims=True) # (N, 1)

        # --- per-edge log_alpha via one-hot gather matmuls --------------------
        w = (jnp.dot(R, s_nb, preferred_element_type=jnp.float32)
             + jnp.dot(C, s_self, preferred_element_type=jnp.float32)
             + batt)                                               # (E, 1)

        # --- hard_concrete_sample(training=True) ------------------------------
        gate = _sigmoid((noise_ref[l] + w) / temp)
        mask = jnp.clip(gate * (ZETA - GAMMA) + GAMMA, 0.0, 1.0)   # (E, 1)

        # --- L0 penalty contribution for this layer ---------------------------
        sig = _sigmoid(w - temp * LOG_RATIO)
        l0_acc = l0_acc + jnp.sum(sig, axis=0, keepdims=True) / float(E)

        # --- symmetric degree normalization (adjacency stays sparse) ----------
        # Edge list contains both directions, so the row-degree also covers
        # every col index gathered below.
        rowsum = jnp.dot(Rt, mask, preferred_element_type=jnp.float32) + 1e-6   # (N, 1)
        d_inv_sqrt = jnp.clip(lax.rsqrt(rowsum), 0.0, 10.0)
        values = (mask
                  * jnp.dot(R, d_inv_sqrt, preferred_element_type=jnp.float32)
                  * jnp.dot(C, d_inv_sqrt, preferred_element_type=jnp.float32)) # (E, 1)

        # --- GCN propagation: out[i] = sum_{e: row[e]=i} values[e] * x[col[e]] -
        msgs = values * jnp.dot(C, x, preferred_element_type=jnp.float32)        # (E, H)
        x = jnp.dot(Rt, msgs, preferred_element_type=jnp.float32)                # (N, H)
        embeds_sum = embeds_sum + x

        # --- reg loss: sum of squared attention-net parameters ----------------
        reg_acc = (reg_acc + _sumsq(wcat) + _sumsq(bcat)
                   + _sumsq(watt_nb) + _sumsq(watt_self) + _sumsq(batt))

    # --- BPR loss on summed embeddings (fused tail, no separate launch) -------
    anc = jnp.dot(usel_ref[...], embeds_sum, preferred_element_type=jnp.float32)  # (B, H)
    pos = jnp.dot(isel_ref[...], embeds_sum, preferred_element_type=jnp.float32)
    neg = jnp.dot(nsel_ref[...], embeds_sum, preferred_element_type=jnp.float32)
    diff = jnp.sum(anc * pos - anc * neg, axis=-1, keepdims=True)                 # (B, 1)
    # -log(sigmoid(d)) = softplus(-d), numerically stable
    per_sample = jnp.maximum(-diff, 0.0) + jnp.log(1.0 + jnp.exp(-jnp.abs(diff)))
    bpr = jnp.sum(per_sample, axis=0, keepdims=True) / float(diff.shape[0])       # (1, 1)

    loss_ref[...] = bpr + REG * reg_acc + LAMBDA0 * l0_acc


# ----------------------------- wrapper ----------------------------------------
def denoising_forward(params, features, R, Rt, C, usel, isel, nsel,
                      temperature, noise_logits):
    """Mirrors DenoisingNet.forward(users, items, neg_items, temperature)."""
    zeros_h = jnp.zeros((1, H), jnp.float32)
    wcat = jnp.stack([jnp.concatenate([p["w_nb"], p["w_self"]], axis=1)
                      for p in params])                              # (L, H, 2H)
    bcat = jnp.stack([jnp.concatenate([p["b_nb"], p["b_self"]], axis=1)
                      for p in params])                              # (L, 1, 2H)
    watt_nb = jnp.stack([jnp.concatenate([p["w_att1"], zeros_h], axis=1)
                         for p in params])                           # (L, 1, 2H)
    watt_self = jnp.stack([jnp.concatenate([zeros_h, p["w_att2"]], axis=1)
                           for p in params])                         # (L, 1, 2H)
    batt = jnp.stack([p["b_att"] for p in params])                   # (L, 1, 1)
    temp = jnp.full((1, 1), temperature, jnp.float32)

    vmem = pl.BlockSpec(memory_space=pltpu.MemorySpace.VMEM)
    smem = pl.BlockSpec(memory_space=pltpu.MemorySpace.SMEM)
    out = pl.pallas_call(
        fused_forward_kernel,
        out_shape=jax.ShapeDtypeStruct((1, 1), jnp.float32),
        in_specs=[smem] + [vmem] * 13,
        out_specs=vmem,
    )(temp, features, R, Rt, C, wcat, bcat, watt_nb, watt_self, batt,
      noise_logits, usel, isel, nsel)
    return out[0, 0]


# ----------------------------- setup / main ------------------------------------
def init_params(key):
    """Deterministic init matching the shapes of DenoisingNet.__init__."""
    params = []
    for layer in range(NUM_LAYERS):
        ks = jax.random.split(jax.random.fold_in(key, layer), 8)
        bnd = 1.0 / jnp.sqrt(H)
        bnd2 = 1.0 / jnp.sqrt(2 * H)
        u = lambda k, shape, b: jax.random.uniform(k, shape, jnp.float32, -b, b)
        params.append(dict(
            w_nb=u(ks[0], (H, H), bnd),     b_nb=u(ks[1], (1, H), bnd),
            w_self=u(ks[2], (H, H), bnd),   b_self=u(ks[3], (1, H), bnd),
            w_att1=u(ks[4], (1, H), bnd2),  w_att2=u(ks[5], (1, H), bnd2),
            b_att=u(ks[6], (1, 1), bnd2),
        ))
    return params


def build_edges():
    # Symmetric bipartite user-item edges (both directions inserted, unique),
    # so torch.sparse coalesce would be the identity here.
    rows, cols = [], []
    for u in range(USER_NUM):
        for it in (u % ITEM_NUM, (u + 3) % ITEM_NUM):
            rows += [u, USER_NUM + it]
            cols += [USER_NUM + it, u]
    return jnp.array(rows, jnp.int32), jnp.array(cols, jnp.int32)


if __name__ == "__main__":
    key = jax.random.PRNGKey(0)
    k_feat, k_param, k_noise = jax.random.split(key, 3)

    features = jax.random.normal(k_feat, (N, H), jnp.float32) * 0.1
    params = init_params(k_param)
    row, col = build_edges()
    E = int(row.shape[0])

    # one-hot incidence matrices for the static edge structure (glue, host-side)
    R = jax.nn.one_hot(row, N, dtype=jnp.float32)     # (E, N)
    C = jax.nn.one_hot(col, N, dtype=jnp.float32)     # (E, N)
    Rt = R.T                                          # (N, E)

    users = jnp.array([0, 1, 2, 3], jnp.int32)
    items = jnp.array([0, 1, 2, 3], jnp.int32)
    neg_items = jnp.array([4, 5, 6, 7], jnp.int32)
    usel = jax.nn.one_hot(users, N, dtype=jnp.float32)              # (B, N)
    isel = jax.nn.one_hot(USER_NUM + items, N, dtype=jnp.float32)   # (B, N)
    nsel = jax.nn.one_hot(USER_NUM + neg_items, N, dtype=jnp.float32)

    # hard-concrete uniform noise (training=True path), precomputed as logits
    noise = []
    for layer in range(NUM_LAYERS):
        u = jax.random.uniform(jax.random.fold_in(k_noise, layer), (E, 1),
                               jnp.float32, 1e-7, 1.0 - 1e-7)
        noise.append(jnp.log(u) - jnp.log(1.0 - u))
    noise_logits = jnp.stack(noise)                   # (L, E, 1)

    temperature = 0.5

    loss = denoising_forward(params, features, R, Rt, C, usel, isel, nsel,
                             temperature, noise_logits)
    loss = jax.block_until_ready(loss)
    assert jnp.isfinite(loss)
    print("KERNEL_OK")
</pallas_src>

<mosaic_0001>
module attributes {stable_mosaic.version = 11 : i64} {
  func.func @fused_forward_kernel(%arg0: memref<1x1xf32, #tpu.memory_space<smem>>, %arg1: memref<16x32xf32, #tpu.memory_space<vmem>>, %arg2: memref<32x16xf32, #tpu.memory_space<vmem>>, %arg3: memref<16x32xf32, #tpu.memory_space<vmem>>, %arg4: memref<32x16xf32, #tpu.memory_space<vmem>>, %arg5: memref<2x32x64xf32, #tpu.memory_space<vmem>>, %arg6: memref<2x1x64xf32, #tpu.memory_space<vmem>>, %arg7: memref<2x1x64xf32, #tpu.memory_space<vmem>>, %arg8: memref<2x1x64xf32, #tpu.memory_space<vmem>>, %arg9: memref<2x1x1xf32, #tpu.memory_space<vmem>>, %arg10: memref<2x32x1xf32, #tpu.memory_space<vmem>>, %arg11: memref<4x16xf32, #tpu.memory_space<vmem>>, %arg12: memref<4x16xf32, #tpu.memory_space<vmem>>, %arg13: memref<4x16xf32, #tpu.memory_space<vmem>>, %arg14: memref<1x1xf32, #tpu.memory_space<vmem>>) attributes {dimension_semantics = [], scalar_prefetch = 0 : i64, scratch_operands = 0 : i64, tpu.core_type = #tpu.core_type<tc>} {
    %c0 = arith.constant 0 : index
    %c0_0 = arith.constant 0 : index
    %0 = memref.load %arg0[%c0, %c0_0] : memref<1x1xf32, #tpu.memory_space<smem>>
    %c0_1 = arith.constant 0 : index
    %c0_2 = arith.constant 0 : index
    %1 = vector.load %arg1[%c0_1, %c0_2] : memref<16x32xf32, #tpu.memory_space<vmem>>, vector<16x32xf32>
    %c0_3 = arith.constant 0 : index
    %c0_4 = arith.constant 0 : index
    %2 = vector.load %arg2[%c0_3, %c0_4] : memref<32x16xf32, #tpu.memory_space<vmem>>, vector<32x16xf32>
    %c0_5 = arith.constant 0 : index
    %c0_6 = arith.constant 0 : index
    %3 = vector.load %arg3[%c0_5, %c0_6] : memref<16x32xf32, #tpu.memory_space<vmem>>, vector<16x32xf32>
    %c0_7 = arith.constant 0 : index
    %c0_8 = arith.constant 0 : index
    %4 = vector.load %arg4[%c0_7, %c0_8] : memref<32x16xf32, #tpu.memory_space<vmem>>, vector<32x16xf32>
    %cst = arith.constant 0.000000e+00 : f32
    %5 = vector.broadcast %cst : f32 to vector<1x1xf32>
    %cst_9 = arith.constant 0.000000e+00 : f32
    %6 = vector.broadcast %cst_9 : f32 to vector<1x1xf32>
    %c0_10 = arith.constant 0 : index
    %c0_11 = arith.constant 0 : index
    %c0_12 = arith.constant 0 : index
    %7 = vector.load %arg5[%c0_10, %c0_11, %c0_12] : memref<2x32x64xf32, #tpu.memory_space<vmem>>, vector<1x32x64xf32>
    %8 = vector.shape_cast %7 : vector<1x32x64xf32> to vector<32x64xf32>
    %c0_13 = arith.constant 0 : index
    %c0_14 = arith.constant 0 : index
    %c0_15 = arith.constant 0 : index
    %9 = vector.load %arg6[%c0_13, %c0_14, %c0_15] : memref<2x1x64xf32, #tpu.memory_space<vmem>>, vector<1x1x64xf32>
    %10 = vector.shape_cast %9 : vector<1x1x64xf32> to vector<1x64xf32>
    %c0_16 = arith.constant 0 : index
    %c0_17 = arith.constant 0 : index
    %c0_18 = arith.constant 0 : index
    %11 = vector.load %arg7[%c0_16, %c0_17, %c0_18] : memref<2x1x64xf32, #tpu.memory_space<vmem>>, vector<1x1x64xf32>
    %12 = vector.shape_cast %11 : vector<1x1x64xf32> to vector<1x64xf32>
    %c0_19 = arith.constant 0 : index
    %c0_20 = arith.constant 0 : index
    %c0_21 = arith.constant 0 : index
    %13 = vector.load %arg8[%c0_19, %c0_20, %c0_21] : memref<2x1x64xf32, #tpu.memory_space<vmem>>, vector<1x1x64xf32>
    %14 = vector.shape_cast %13 : vector<1x1x64xf32> to vector<1x64xf32>
    %c0_22 = arith.constant 0 : index
    %c0_23 = arith.constant 0 : index
    %c0_24 = arith.constant 0 : index
    %15 = vector.load %arg9[%c0_22, %c0_23, %c0_24] : memref<2x1x1xf32, #tpu.memory_space<vmem>>, vector<1x1x1xf32>
    %16 = vector.shape_cast %15 : vector<1x1x1xf32> to vector<1x1xf32>
    %cst_25 = arith.constant dense<0.000000e+00> : vector<16x64xf32>
    %17 = tpu.matmul %1, %8, %cst_25 {dimension_numbers = #tpu.dot_dimension_numbers<[1], [0], [0], [1], [0, 0, 1, 1], [], []>} : vector<16x32xf32>, vector<32x64xf32>, vector<16x64xf32> -> vector<16x64xf32>
    %18 = vector.broadcast %10 : vector<1x64xf32> to vector<16x64xf32>
    %19 = arith.addf %17, %18 : vector<16x64xf32>
    %cst_26 = arith.constant 0.000000e+00 : f32
    %20 = vector.broadcast %cst_26 : f32 to vector<16x64xf32>
    %21 = arith.maximumf %19, %20 : vector<16x64xf32>
    %22 = vector.broadcast %12 : vector<1x64xf32> to vector<16x64xf32>
    %23 = arith.mulf %21, %22 : vector<16x64xf32>
    %cst_27 = arith.constant dense<0.000000e+00> : vector<16xf32>
    %24 = vector.multi_reduction <add>, %23, %cst_27 [1] : vector<16x64xf32> to vector<16xf32>
    %25 = vector.shape_cast %24 : vector<16xf32> to vector<16x1xf32>
    %26 = vector.broadcast %14 : vector<1x64xf32> to vector<16x64xf32>
    %27 = arith.mulf %21, %26 : vector<16x64xf32>
    %cst_28 = arith.constant dense<0.000000e+00> : vector<16xf32>
    %28 = vector.multi_reduction <add>, %27, %cst_28 [1] : vector<16x64xf32> to vector<16xf32>
    %29 = vector.shape_cast %28 : vector<16xf32> to vector<16x1xf32>
    %cst_29 = arith.constant dense<0.000000e+00> : vector<32x1xf32>
    %30 = tpu.matmul %2, %25, %cst_29 {dimension_numbers = #tpu.dot_dimension_numbers<[1], [0], [0], [1], [0, 0, 1, 1], [], []>} : vector<32x16xf32>, vector<16x1xf32>, vector<32x1xf32> -> vector<32x1xf32>
    %cst_30 = arith.constant dense<0.000000e+00> : vector<32x1xf32>
    %31 = tpu.matmul %4, %29, %cst_30 {dimension_numbers = #tpu.dot_dimension_numbers<[1], [0], [0], [1], [0, 0, 1, 1], [], []>} : vector<32x16xf32>, vector<16x1xf32>, vector<32x1xf32> -> vector<32x1xf32>
    %32 = arith.addf %30, %31 : vector<32x1xf32>
    %33 = vector.broadcast %16 : vector<1x1xf32> to vector<32x1xf32>
    %34 = arith.addf %32, %33 : vector<32x1xf32>
    %c0_31 = arith.constant 0 : index
    %c0_32 = arith.constant 0 : index
    %c0_33 = arith.constant 0 : index
    %35 = vector.load %arg10[%c0_31, %c0_32, %c0_33] : memref<2x32x1xf32, #tpu.memory_space<vmem>>, vector<1x32x1xf32>
    %36 = vector.shape_cast %35 : vector<1x32x1xf32> to vector<32x1xf32>
    %37 = arith.addf %36, %34 : vector<32x1xf32>
    %38 = vector.broadcast %0 : f32 to vector<32x1xf32>
    %39 = arith.divf %37, %38 : vector<32x1xf32>
    %cst_34 = arith.constant 0.000000e+00 : f32
    %40 = vector.broadcast %cst_34 : f32 to vector<32x1xf32>
    %41 = arith.subf %40, %39 : vector<32x1xf32>
    %42 = math.exp %41 : vector<32x1xf32>
    %cst_35 = arith.constant 1.000000e+00 : f32
    %43 = vector.broadcast %cst_35 : f32 to vector<32x1xf32>
    %44 = arith.addf %43, %42 : vector<32x1xf32>
    %45 = tpu.reciprocal %44 : vector<32x1xf32> -> vector<32x1xf32>
    %cst_36 = arith.constant 1.500000e+00 : f32
    %46 = vector.broadcast %cst_36 : f32 to vector<32x1xf32>
    %47 = arith.mulf %45, %46 : vector<32x1xf32>
    %cst_37 = arith.constant -4.500000e-01 : f32
    %48 = vector.broadcast %cst_37 : f32 to vector<32x1xf32>
    %49 = arith.addf %47, %48 : vector<32x1xf32>
    %cst_38 = arith.constant 0.000000e+00 : f32
    %cst_39 = arith.constant 1.000000e+00 : f32
    %50 = vector.broadcast %cst_38 : f32 to vector<32x1xf32>
    %51 = arith.maximumf %50, %49 : vector<32x1xf32>
    %52 = vector.broadcast %cst_39 : f32 to vector<32x1xf32>
    %53 = arith.minimumf %52, %51 : vector<32x1xf32>
    %cst_40 = arith.constant -0.847297847 : f32
    %54 = arith.mulf %0, %cst_40 : f32
    %55 = vector.broadcast %54 : f32 to vector<32x1xf32>
    %56 = arith.subf %34, %55 : vector<32x1xf32>
    %cst_41 = arith.constant 0.000000e+00 : f32
    %57 = vector.broadcast %cst_41 : f32 to vector<32x1xf32>
    %58 = arith.subf %57, %56 : vector<32x1xf32>
    %59 = math.exp %58 : vector<32x1xf32>
    %cst_42 = arith.constant 1.000000e+00 : f32
    %60 = vector.broadcast %cst_42 : f32 to vector<32x1xf32>
    %61 = arith.addf %60, %59 : vector<32x1xf32>
    %62 = tpu.reciprocal %61 : vector<32x1xf32> -> vector<32x1xf32>
    %cst_43 = arith.constant dense<0.000000e+00> : vector<1xf32>
    %63 = vector.multi_reduction <add>, %62, %cst_43 [0] : vector<32x1xf32> to vector<1xf32>
    %64 = vector.shape_cast %63 : vector<1xf32> to vector<1x1xf32>
    %cst_44 = arith.constant 3.200000e+01 : f32
    %65 = vector.broadcast %cst_44 : f32 to vector<1x1xf32>
    %66 = arith.divf %64, %65 : vector<1x1xf32>
    %67 = arith.addf %5, %66 : vector<1x1xf32>
    %cst_45 = arith.constant dense<0.000000e+00> : vector<16x1xf32>
    %68 = tpu.matmul %3, %53, %cst_45 {dimension_numbers = #tpu.dot_dimension_numbers<[1], [0], [0], [1], [0, 0, 1, 1], [], []>} : vector<16x32xf32>, vector<32x1xf32>, vector<16x1xf32> -> vector<16x1xf32>
    %cst_46 = arith.constant 9.99999997E-7 : f32
    %69 = vector.broadcast %cst_46 : f32 to vector<16x1xf32>
    %70 = arith.addf %68, %69 : vector<16x1xf32>
    %71 = math.rsqrt %70 : vector<16x1xf32>
    %cst_47 = arith.constant 0.000000e+00 : f32
    %cst_48 = arith.constant 1.000000e+01 : f32
    %72 = vector.broadcast %cst_47 : f32 to vector<16x1xf32>
    %73 = arith.maximumf %72, %71 : vector<16x1xf32>
    %74 = vector.broadcast %cst_48 : f32 to vector<16x1xf32>
    %75 = arith.minimumf %74, %73 : vector<16x1xf32>
    %cst_49 = arith.constant dense<0.000000e+00> : vector<32x1xf32>
    %76 = tpu.matmul %2, %75, %cst_49 {dimension_numbers = #tpu.dot_dimension_numbers<[1], [0], [0], [1], [0, 0, 1, 1], [], []>} : vector<32x16xf32>, vector<16x1xf32>, vector<32x1xf32> -> vector<32x1xf32>
    %77 = arith.mulf %53, %76 : vector<32x1xf32>
    %cst_50 = arith.constant dense<0.000000e+00> : vector<32x1xf32>
    %78 = tpu.matmul %4, %75, %cst_50 {dimension_numbers = #tpu.dot_dimension_numbers<[1], [0], [0], [1], [0, 0, 1, 1], [], []>} : vector<32x16xf32>, vector<16x1xf32>, vector<32x1xf32> -> vector<32x1xf32>
    %79 = arith.mulf %77, %78 : vector<32x1xf32>
    %cst_51 = arith.constant dense<0.000000e+00> : vector<32x32xf32>
    %80 = tpu.matmul %4, %1, %cst_51 {dimension_numbers = #tpu.dot_dimension_numbers<[1], [0], [0], [1], [0, 0, 1, 1], [], []>} : vector<32x16xf32>, vector<16x32xf32>, vector<32x32xf32> -> vector<32x32xf32>
    %81 = vector.broadcast %79 : vector<32x1xf32> to vector<32x32xf32>
    %82 = arith.mulf %81, %80 : vector<32x32xf32>
    %cst_52 = arith.constant dense<0.000000e+00> : vector<16x32xf32>
    %83 = tpu.matmul %3, %82, %cst_52 {dimension_numbers = #tpu.dot_dimension_numbers<[1], [0], [0], [1], [0, 0, 1, 1], [], []>} : vector<16x32xf32>, vector<32x32xf32>, vector<16x32xf32> -> vector<16x32xf32>
    %84 = arith.addf %1, %83 : vector<16x32xf32>
    %85 = arith.mulf %8, %8 : vector<32x64xf32>
    %cst_53 = arith.constant dense<0.000000e+00> : vector<32xf32>
    %86 = vector.multi_reduction <add>, %85, %cst_53 [1] : vector<32x64xf32> to vector<32xf32>
    %87 = vector.shape_cast %86 : vector<32xf32> to vector<32x1xf32>
    %cst_54 = arith.constant dense<0.000000e+00> : vector<1xf32>
    %88 = vector.multi_reduction <add>, %87, %cst_54 [0] : vector<32x1xf32> to vector<1xf32>
    %89 = vector.shape_cast %88 : vector<1xf32> to vector<1x1xf32>
    %90 = arith.addf %6, %89 : vector<1x1xf32>
    %91 = arith.mulf %10, %10 : vector<1x64xf32>
    %cst_55 = arith.constant dense<0.000000e+00> : vector<1xf32>
    %92 = vector.multi_reduction <add>, %91, %cst_55 [1] : vector<1x64xf32> to vector<1xf32>
    %93 = vector.shape_cast %92 : vector<1xf32> to vector<1x1xf32>
    %cst_56 = arith.constant dense<0.000000e+00> : vector<1xf32>
    %94 = vector.multi_reduction <add>, %93, %cst_56 [0] : vector<1x1xf32> to vector<1xf32>
    %95 = vector.shape_cast %94 : vector<1xf32> to vector<1x1xf32>
    %96 = arith.addf %90, %95 : vector<1x1xf32>
    %97 = arith.mulf %12, %12 : vector<1x64xf32>
    %cst_57 = arith.constant dense<0.000000e+00> : vector<1xf32>
    %98 = vector.multi_reduction <add>, %97, %cst_57 [1] : vector<1x64xf32> to vector<1xf32>
    %99 = vector.shape_cast %98 : vector<1xf32> to vector<1x1xf32>
    %cst_58 = arith.constant dense<0.000000e+00> : vector<1xf32>
    %100 = vector.multi_reduction <add>, %99, %cst_58 [0] : vector<1x1xf32> to vector<1xf32>
    %101 = vector.shape_cast %100 : vector<1xf32> to vector<1x1xf32>
    %102 = arith.addf %96, %101 : vector<1x1xf32>
    %103 = arith.mulf %14, %14 : vector<1x64xf32>
    %cst_59 = arith.constant dense<0.000000e+00> : vector<1xf32>
    %104 = vector.multi_reduction <add>, %103, %cst_59 [1] : vector<1x64xf32> to vector<1xf32>
    %105 = vector.shape_cast %104 : vector<1xf32> to vector<1x1xf32>
    %cst_60 = arith.constant dense<0.000000e+00> : vector<1xf32>
    %106 = vector.multi_reduction <add>, %105, %cst_60 [0] : vector<1x1xf32> to vector<1xf32>
    %107 = vector.shape_cast %106 : vector<1xf32> to vector<1x1xf32>
    %108 = arith.addf %102, %107 : vector<1x1xf32>
    %109 = arith.mulf %16, %16 : vector<1x1xf32>
    %cst_61 = arith.constant dense<0.000000e+00> : vector<1xf32>
    %110 = vector.multi_reduction <add>, %109, %cst_61 [1] : vector<1x1xf32> to vector<1xf32>
    %111 = vector.shape_cast %110 : vector<1xf32> to vector<1x1xf32>
    %cst_62 = arith.constant dense<0.000000e+00> : vector<1xf32>
    %112 = vector.multi_reduction <add>, %111, %cst_62 [0] : vector<1x1xf32> to vector<1xf32>
    %113 = vector.shape_cast %112 : vector<1xf32> to vector<1x1xf32>
    %114 = arith.addf %108, %113 : vector<1x1xf32>
    %c1 = arith.constant 1 : index
    %c0_63 = arith.constant 0 : index
    %c0_64 = arith.constant 0 : index
    %115 = vector.load %arg5[%c1, %c0_63, %c0_64] : memref<2x32x64xf32, #tpu.memory_space<vmem>>, vector<1x32x64xf32>
    %116 = vector.shape_cast %115 : vector<1x32x64xf32> to vector<32x64xf32>
    %c1_65 = arith.constant 1 : index
    %c0_66 = arith.constant 0 : index
    %c0_67 = arith.constant 0 : index
    %117 = vector.load %arg6[%c1_65, %c0_66, %c0_67] : memref<2x1x64xf32, #tpu.memory_space<vmem>>, vector<1x1x64xf32>
    %118 = vector.shape_cast %117 : vector<1x1x64xf32> to vector<1x64xf32>
    %c1_68 = arith.constant 1 : index
    %c0_69 = arith.constant 0 : index
    %c0_70 = arith.constant 0 : index
    %119 = vector.load %arg7[%c1_68, %c0_69, %c0_70] : memref<2x1x64xf32, #tpu.memory_space<vmem>>, vector<1x1x64xf32>
    %120 = vector.shape_cast %119 : vector<1x1x64xf32> to vector<1x64xf32>
    %c1_71 = arith.constant 1 : index
    %c0_72 = arith.constant 0 : index
    %c0_73 = arith.constant 0 : index
    %121 = vector.load %arg8[%c1_71, %c0_72, %c0_73] : memref<2x1x64xf32, #tpu.memory_space<vmem>>, vector<1x1x64xf32>
    %122 = vector.shape_cast %121 : vector<1x1x64xf32> to vector<1x64xf32>
    %c1_74 = arith.constant 1 : index
    %c0_75 = arith.constant 0 : index
    %c0_76 = arith.constant 0 : index
    %123 = vector.load %arg9[%c1_74, %c0_75, %c0_76] : memref<2x1x1xf32, #tpu.memory_space<vmem>>, vector<1x1x1xf32>
    %124 = vector.shape_cast %123 : vector<1x1x1xf32> to vector<1x1xf32>
    %cst_77 = arith.constant dense<0.000000e+00> : vector<16x64xf32>
    %125 = tpu.matmul %83, %116, %cst_77 {dimension_numbers = #tpu.dot_dimension_numbers<[1], [0], [0], [1], [0, 0, 1, 1], [], []>} : vector<16x32xf32>, vector<32x64xf32>, vector<16x64xf32> -> vector<16x64xf32>
    %126 = vector.broadcast %118 : vector<1x64xf32> to vector<16x64xf32>
    %127 = arith.addf %125, %126 : vector<16x64xf32>
    %cst_78 = arith.constant 0.000000e+00 : f32
    %128 = vector.broadcast %cst_78 : f32 to vector<16x64xf32>
    %129 = arith.maximumf %127, %128 : vector<16x64xf32>
    %130 = vector.broadcast %120 : vector<1x64xf32> to vector<16x64xf32>
    %131 = arith.mulf %129, %130 : vector<16x64xf32>
    %cst_79 = arith.constant dense<0.000000e+00> : vector<16xf32>
    %132 = vector.multi_reduction <add>, %131, %cst_79 [1] : vector<16x64xf32> to vector<16xf32>
    %133 = vector.shape_cast %132 : vector<16xf32> to vector<16x1xf32>
    %134 = vector.broadcast %122 : vector<1x64xf32> to vector<16x64xf32>
    %135 = arith.mulf %129, %134 : vector<16x64xf32>
    %cst_80 = arith.constant dense<0.000000e+00> : vector<16xf32>
    %136 = vector.multi_reduction <add>, %135, %cst_80 [1] : vector<16x64xf32> to vector<16xf32>
    %137 = vector.shape_cast %136 : vector<16xf32> to vector<16x1xf32>
    %cst_81 = arith.constant dense<0.000000e+00> : vector<32x1xf32>
    %138 = tpu.matmul %2, %133, %cst_81 {dimension_numbers = #tpu.dot_dimension_numbers<[1], [0], [0], [1], [0, 0, 1, 1], [], []>} : vector<32x16xf32>, vector<16x1xf32>, vector<32x1xf32> -> vector<32x1xf32>
    %cst_82 = arith.constant dense<0.000000e+00> : vector<32x1xf32>
    %139 = tpu.matmul %4, %137, %cst_82 {dimension_numbers = #tpu.dot_dimension_numbers<[1], [0], [0], [1], [0, 0, 1, 1], [], []>} : vector<32x16xf32>, vector<16x1xf32>, vector<32x1xf32> -> vector<32x1xf32>
    %140 = arith.addf %138, %139 : vector<32x1xf32>
    %141 = vector.broadcast %124 : vector<1x1xf32> to vector<32x1xf32>
    %142 = arith.addf %140, %141 : vector<32x1xf32>
    %c1_83 = arith.constant 1 : index
    %c0_84 = arith.constant 0 : index
    %c0_85 = arith.constant 0 : index
    %143 = vector.load %arg10[%c1_83, %c0_84, %c0_85] : memref<2x32x1xf32, #tpu.memory_space<vmem>>, vector<1x32x1xf32>
    %144 = vector.shape_cast %143 : vector<1x32x1xf32> to vector<32x1xf32>
    %145 = arith.addf %144, %142 : vector<32x1xf32>
    %146 = vector.broadcast %0 : f32 to vector<32x1xf32>
    %147 = arith.divf %145, %146 : vector<32x1xf32>
    %cst_86 = arith.constant 0.000000e+00 : f32
    %148 = vector.broadcast %cst_86 : f32 to vector<32x1xf32>
    %149 = arith.subf %148, %147 : vector<32x1xf32>
    %150 = math.exp %149 : vector<32x1xf32>
    %cst_87 = arith.constant 1.000000e+00 : f32
    %151 = vector.broadcast %cst_87 : f32 to vector<32x1xf32>
    %152 = arith.addf %151, %150 : vector<32x1xf32>
    %153 = tpu.reciprocal %152 : vector<32x1xf32> -> vector<32x1xf32>
    %cst_88 = arith.constant 1.500000e+00 : f32
    %154 = vector.broadcast %cst_88 : f32 to vector<32x1xf32>
    %155 = arith.mulf %153, %154 : vector<32x1xf32>
    %cst_89 = arith.constant -4.500000e-01 : f32
    %156 = vector.broadcast %cst_89 : f32 to vector<32x1xf32>
    %157 = arith.addf %155, %156 : vector<32x1xf32>
    %cst_90 = arith.constant 0.000000e+00 : f32
    %cst_91 = arith.constant 1.000000e+00 : f32
    %158 = vector.broadcast %cst_90 : f32 to vector<32x1xf32>
    %159 = arith.maximumf %158, %157 : vector<32x1xf32>
    %160 = vector.broadcast %cst_91 : f32 to vector<32x1xf32>
    %161 = arith.minimumf %160, %159 : vector<32x1xf32>
    %cst_92 = arith.constant -0.847297847 : f32
    %162 = arith.mulf %0, %cst_92 : f32
    %163 = vector.broadcast %162 : f32 to vector<32x1xf32>
    %164 = arith.subf %142, %163 : vector<32x1xf32>
    %cst_93 = arith.constant 0.000000e+00 : f32
    %165 = vector.broadcast %cst_93 : f32 to vector<32x1xf32>
    %166 = arith.subf %165, %164 : vector<32x1xf32>
    %167 = math.exp %166 : vector<32x1xf32>
    %cst_94 = arith.constant 1.000000e+00 : f32
    %168 = vector.broadcast %cst_94 : f32 to vector<32x1xf32>
    %169 = arith.addf %168, %167 : vector<32x1xf32>
    %170 = tpu.reciprocal %169 : vector<32x1xf32> -> vector<32x1xf32>
    %cst_95 = arith.constant dense<0.000000e+00> : vector<1xf32>
    %171 = vector.multi_reduction <add>, %170, %cst_95 [0] : vector<32x1xf32> to vector<1xf32>
    %172 = vector.shape_cast %171 : vector<1xf32> to vector<1x1xf32>
    %cst_96 = arith.constant 3.200000e+01 : f32
    %173 = vector.broadcast %cst_96 : f32 to vector<1x1xf32>
    %174 = arith.divf %172, %173 : vector<1x1xf32>
    %175 = arith.addf %67, %174 : vector<1x1xf32>
    %cst_97 = arith.constant dense<0.000000e+00> : vector<16x1xf32>
    %176 = tpu.matmul %3, %161, %cst_97 {dimension_numbers = #tpu.dot_dimension_numbers<[1], [0], [0], [1], [0, 0, 1, 1], [], []>} : vector<16x32xf32>, vector<32x1xf32>, vector<16x1xf32> -> vector<16x1xf32>
    %cst_98 = arith.constant 9.99999997E-7 : f32
    %177 = vector.broadcast %cst_98 : f32 to vector<16x1xf32>
    %178 = arith.addf %176, %177 : vector<16x1xf32>
    %179 = math.rsqrt %178 : vector<16x1xf32>
    %cst_99 = arith.constant 0.000000e+00 : f32
    %cst_100 = arith.constant 1.000000e+01 : f32
    %180 = vector.broadcast %cst_99 : f32 to vector<16x1xf32>
    %181 = arith.maximumf %180, %179 : vector<16x1xf32>
    %182 = vector.broadcast %cst_100 : f32 to vector<16x1xf32>
    %183 = arith.minimumf %182, %181 : vector<16x1xf32>
    %cst_101 = arith.constant dense<0.000000e+00> : vector<32x1xf32>
    %184 = tpu.matmul %2, %183, %cst_101 {dimension_numbers = #tpu.dot_dimension_numbers<[1], [0], [0], [1], [0, 0, 1, 1], [], []>} : vector<32x16xf32>, vector<16x1xf32>, vector<32x1xf32> -> vector<32x1xf32>
    %185 = arith.mulf %161, %184 : vector<32x1xf32>
    %cst_102 = arith.constant dense<0.000000e+00> : vector<32x1xf32>
    %186 = tpu.matmul %4, %183, %cst_102 {dimension_numbers = #tpu.dot_dimension_numbers<[1], [0], [0], [1], [0, 0, 1, 1], [], []>} : vector<32x16xf32>, vector<16x1xf32>, vector<32x1xf32> -> vector<32x1xf32>
    %187 = arith.mulf %185, %186 : vector<32x1xf32>
    %cst_103 = arith.constant dense<0.000000e+00> : vector<32x32xf32>
    %188 = tpu.matmul %4, %83, %cst_103 {dimension_numbers = #tpu.dot_dimension_numbers<[1], [0], [0], [1], [0, 0, 1, 1], [], []>} : vector<32x16xf32>, vector<16x32xf32>, vector<32x32xf32> -> vector<32x32xf32>
    %189 = vector.broadcast %187 : vector<32x1xf32> to vector<32x32xf32>
    %190 = arith.mulf %189, %188 : vector<32x32xf32>
    %cst_104 = arith.constant dense<0.000000e+00> : vector<16x32xf32>
    %191 = tpu.matmul %3, %190, %cst_104 {dimension_numbers = #tpu.dot_dimension_numbers<[1], [0], [0], [1], [0, 0, 1, 1], [], []>} : vector<16x32xf32>, vector<32x32xf32>, vector<16x32xf32> -> vector<16x32xf32>
    %192 = arith.addf %84, %191 : vector<16x32xf32>
    %193 = arith.mulf %116, %116 : vector<32x64xf32>
    %cst_105 = arith.constant dense<0.000000e+00> : vector<32xf32>
    %194 = vector.multi_reduction <add>, %193, %cst_105 [1] : vector<32x64xf32> to vector<32xf32>
    %195 = vector.shape_cast %194 : vector<32xf32> to vector<32x1xf32>
    %cst_106 = arith.constant dense<0.000000e+00> : vector<1xf32>
    %196 = vector.multi_reduction <add>, %195, %cst_106 [0] : vector<32x1xf32> to vector<1xf32>
    %197 = vector.shape_cast %196 : vector<1xf32> to vector<1x1xf32>
    %198 = arith.addf %114, %197 : vector<1x1xf32>
    %199 = arith.mulf %118, %118 : vector<1x64xf32>
    %cst_107 = arith.constant dense<0.000000e+00> : vector<1xf32>
    %200 = vector.multi_reduction <add>, %199, %cst_107 [1] : vector<1x64xf32> to vector<1xf32>
    %201 = vector.shape_cast %200 : vector<1xf32> to vector<1x1xf32>
    %cst_108 = arith.constant dense<0.000000e+00> : vector<1xf32>
    %202 = vector.multi_reduction <add>, %201, %cst_108 [0] : vector<1x1xf32> to vector<1xf32>
    %203 = vector.shape_cast %202 : vector<1xf32> to vector<1x1xf32>
    %204 = arith.addf %198, %203 : vector<1x1xf32>
    %205 = arith.mulf %120, %120 : vector<1x64xf32>
    %cst_109 = arith.constant dense<0.000000e+00> : vector<1xf32>
    %206 = vector.multi_reduction <add>, %205, %cst_109 [1] : vector<1x64xf32> to vector<1xf32>
    %207 = vector.shape_cast %206 : vector<1xf32> to vector<1x1xf32>
    %cst_110 = arith.constant dense<0.000000e+00> : vector<1xf32>
    %208 = vector.multi_reduction <add>, %207, %cst_110 [0] : vector<1x1xf32> to vector<1xf32>
    %209 = vector.shape_cast %208 : vector<1xf32> to vector<1x1xf32>
    %210 = arith.addf %204, %209 : vector<1x1xf32>
    %211 = arith.mulf %122, %122 : vector<1x64xf32>
    %cst_111 = arith.constant dense<0.000000e+00> : vector<1xf32>
    %212 = vector.multi_reduction <add>, %211, %cst_111 [1] : vector<1x64xf32> to vector<1xf32>
    %213 = vector.shape_cast %212 : vector<1xf32> to vector<1x1xf32>
    %cst_112 = arith.constant dense<0.000000e+00> : vector<1xf32>
    %214 = vector.multi_reduction <add>, %213, %cst_112 [0] : vector<1x1xf32> to vector<1xf32>
    %215 = vector.shape_cast %214 : vector<1xf32> to vector<1x1xf32>
    %216 = arith.addf %210, %215 : vector<1x1xf32>
    %217 = arith.mulf %124, %124 : vector<1x1xf32>
    %cst_113 = arith.constant dense<0.000000e+00> : vector<1xf32>
    %218 = vector.multi_reduction <add>, %217, %cst_113 [1] : vector<1x1xf32> to vector<1xf32>
    %219 = vector.shape_cast %218 : vector<1xf32> to vector<1x1xf32>
    %cst_114 = arith.constant dense<0.000000e+00> : vector<1xf32>
    %220 = vector.multi_reduction <add>, %219, %cst_114 [0] : vector<1x1xf32> to vector<1xf32>
    %221 = vector.shape_cast %220 : vector<1xf32> to vector<1x1xf32>
    %222 = arith.addf %216, %221 : vector<1x1xf32>
    %c0_115 = arith.constant 0 : index
    %c0_116 = arith.constant 0 : index
    %223 = vector.load %arg11[%c0_115, %c0_116] : memref<4x16xf32, #tpu.memory_space<vmem>>, vector<4x16xf32>
    %cst_117 = arith.constant dense<0.000000e+00> : vector<4x32xf32>
    %224 = tpu.matmul %223, %192, %cst_117 {dimension_numbers = #tpu.dot_dimension_numbers<[1], [0], [0], [1], [0, 0, 1, 1], [], []>} : vector<4x16xf32>, vector<16x32xf32>, vector<4x32xf32> -> vector<4x32xf32>
    %c0_118 = arith.constant 0 : index
    %c0_119 = arith.constant 0 : index
    %225 = vector.load %arg12[%c0_118, %c0_119] : memref<4x16xf32, #tpu.memory_space<vmem>>, vector<4x16xf32>
    %cst_120 = arith.constant dense<0.000000e+00> : vector<4x32xf32>
    %226 = tpu.matmul %225, %192, %cst_120 {dimension_numbers = #tpu.dot_dimension_numbers<[1], [0], [0], [1], [0, 0, 1, 1], [], []>} : vector<4x16xf32>, vector<16x32xf32>, vector<4x32xf32> -> vector<4x32xf32>
    %c0_121 = arith.constant 0 : index
    %c0_122 = arith.constant 0 : index
    %227 = vector.load %arg13[%c0_121, %c0_122] : memref<4x16xf32, #tpu.memory_space<vmem>>, vector<4x16xf32>
    %cst_123 = arith.constant dense<0.000000e+00> : vector<4x32xf32>
    %228 = tpu.matmul %227, %192, %cst_123 {dimension_numbers = #tpu.dot_dimension_numbers<[1], [0], [0], [1], [0, 0, 1, 1], [], []>} : vector<4x16xf32>, vector<16x32xf32>, vector<4x32xf32> -> vector<4x32xf32>
    %229 = arith.mulf %224, %226 : vector<4x32xf32>
    %230 = arith.mulf %224, %228 : vector<4x32xf32>
    %231 = arith.subf %229, %230 : vector<4x32xf32>
    %cst_124 = arith.constant dense<0.000000e+00> : vector<4xf32>
    %232 = vector.multi_reduction <add>, %231, %cst_124 [1] : vector<4x32xf32> to vector<4xf32>
    %233 = vector.shape_cast %232 : vector<4xf32> to vector<4x1xf32>
    %cst_125 = arith.constant 0.000000e+00 : f32
    %234 = vector.broadcast %cst_125 : f32 to vector<4x1xf32>
    %235 = arith.subf %234, %233 : vector<4x1xf32>
    %cst_126 = arith.constant 0.000000e+00 : f32
    %236 = vector.broadcast %cst_126 : f32 to vector<4x1xf32>
    %237 = arith.maximumf %235, %236 : vector<4x1xf32>
    %238 = math.absf %233 : vector<4x1xf32>
    %cst_127 = arith.constant 0.000000e+00 : f32
    %239 = vector.broadcast %cst_127 : f32 to vector<4x1xf32>
    %240 = arith.subf %239, %238 : vector<4x1xf32>
    %241 = math.exp %240 : vector<4x1xf32>
    %cst_128 = arith.constant 1.000000e+00 : f32
    %242 = vector.broadcast %cst_128 : f32 to vector<4x1xf32>
    %243 = arith.addf %242, %241 : vector<4x1xf32>
    %244 = math.log %243 : vector<4x1xf32>
    %245 = arith.addf %237, %244 : vector<4x1xf32>
    %cst_129 = arith.constant dense<0.000000e+00> : vector<1xf32>
    %246 = vector.multi_reduction <add>, %245, %cst_129 [0] : vector<4x1xf32> to vector<1xf32>
    %247 = vector.shape_cast %246 : vector<1xf32> to vector<1x1xf32>
    %cst_130 = arith.constant 4.000000e+00 : f32
    %248 = vector.broadcast %cst_130 : f32 to vector<1x1xf32>
    %249 = arith.divf %247, %248 : vector<1x1xf32>
    %cst_131 = arith.constant 9.99999974E-6 : f32
    %250 = vector.broadcast %cst_131 : f32 to vector<1x1xf32>
    %251 = arith.mulf %250, %222 : vector<1x1xf32>
    %252 = arith.addf %249, %251 : vector<1x1xf32>
    %cst_132 = arith.constant 9.99999974E-5 : f32
    %253 = vector.broadcast %cst_132 : f32 to vector<1x1xf32>
    %254 = arith.mulf %253, %175 : vector<1x1xf32>
    %255 = arith.addf %252, %254 : vector<1x1xf32>
    %c0_133 = arith.constant 0 : index
    %c0_134 = arith.constant 0 : index
    %256 = vector.load %arg14[%c0_133, %c0_134] : memref<1x1xf32, #tpu.memory_space<vmem>>, vector<1x1xf32>
    tpu.vector_store %arg14[%c0_133, %c0_134], %255 {strides = array<i32>} : memref<1x1xf32, #tpu.memory_space<vmem>>, vector<1x1xf32>,
    return
  }
}

</mosaic_0001>

<bundles_post_ra>
// kernel: tpu_custom_call.1
= control target key start
LH: loop header
LB: loop body
LE: loop exit
PB: predicated region body
PF: predicated region fallthrough
CT: control target
= control target key end

     0   :  { %vm76_vm0 = vcmask 261120   ;;  %s3136_s0 = inlined_call_operand.<no memory space> [shape: f32[1,1], index: 0, kind: input, shape index: {}]   ;;  %s3137_s1 = inlined_call_operand.vmem [shape: f32[16,32], index: 1, kind: input, shape index: {}]   ;;  %s3138_s2 = inlined_call_operand.vmem [shape: f32[32,16], index: 2, kind: input, shape index: {}]   ;;  %s3139_s3 = inlined_call_operand.vmem [shape: f32[16,32], index: 3, kind: input, shape index: {}]   ;;  %s3140_s4 = inlined_call_operand.vmem [shape: f32[32,16], index: 4, kind: input, shape index: {}]   ;;  %s3141_s5 = inlined_call_operand.vmem [shape: f32[2,32,64], index: 5, kind: input, shape index: {}]   ;;  %s3142_s6 = inlined_call_operand.vmem [shape: f32[2,1,64], index: 6, kind: input, shape index: {}]   ;;  %s3143_s7 = inlined_call_operand.vmem [shape: f32[2,1,64], index: 7, kind: input, shape index: {}]   ;;  %s3144_s8 = inlined_call_operand.vmem [shape: f32[2,1,64], index: 8, kind: input, shape index: {}]   ;;  %s3145_s9 = inlined_call_operand.vmem [shape: f32[2,1,1], index: 9, kind: input, shape index: {}]   ;;  %s3146_s10 = inlined_call_operand.vmem [shape: f32[2,32,1], index: 10, kind: input, shape index: {}]   ;;  %s3147_s11 = inlined_call_operand.vmem [shape: f32[4,16], index: 11, kind: input, shape index: {}]   ;;  %s3148_s12 = inlined_call_operand.vmem [shape: f32[4,16], index: 12, kind: input, shape index: {}]   ;;  %s3149_s13 = inlined_call_operand.vmem [shape: f32[4,16], index: 13, kind: input, shape index: {}]   ;;  %s3150_s14 = inlined_call_operand.hbm [shape: f32[1,1], index: 14, kind: output, shape index: {}]  }
   0x1   :  { %v65_v0 = vld [vmem:[%s3141_s5 + $0x18] sm:$0xff]  ;;  %v64_v1 = vld [vmem:[%s3141_s5 + $0x10] sm:$0xff]  ;;  %v2714_v2 = vld [vmem:[%s3137_s1] sm:$0xff] }
   0x2   :  { %2319 = vmatprep.subr.mxu0 %v65_v0  ;;  %v63_v3 = vld [vmem:[%s3141_s5 + $0x8] sm:$0xff]  ;;  %2327 = vmatprep.mubr.msk.f32.mxu0 %vm76_vm0, %v2714_v2 }
   0x3   :  { %2320 = vmatpush3.msra.mxu0 %v65_v0 }
   0x4   :  { %20 = vsyncpa [#allocation4], 0  ;;  %2321 = vmatprep.subr.mxu0 %v64_v1  ;;  %v62_v4 = vld [vmem:[%s3141_s5] sm:$0xff]  ;;  %v2727_v5 = vld [vmem:[%s3137_s1 + $0x8] sm:$0xff]  ;;  %v71_v6 = vlaneseq  ;;  %vm168_vm1 = vcmask 523264   ;;  %vm189_vm2 = vcmask 130048   ;;  %v402_v39 = vstv %s3136_s0 }
   0x5   :  { %2322 = vmatpush3.msra.mxu0 %v64_v1  ;;  %v2600_v9 = vld [vmem:[%s3142_s6] ss:$0 sm:$0xff]  ;;  %v2763_v30 = vld [vmem:[%s3138_s2 + $0x8] sm:$0xff]  ;;  %v2768_v31 = vld [vmem:[%s3138_s2 + $0x10] sm:$0xff]  ;;  %2512 = vrcp.f32 %v402_v39  ;;  %s444_s21 = smul.f32 -0.84729785, %s3136_s0 }
   0x6   :  { %2323 = vmatprep.subr.mxu0 %v63_v3  ;;  %v72_v7 = vshrl.u32 %v71_v6, 7  ;;  %v2601_v10 = vld [vmem:[%s3143_s7] ss:$0 sm:$0xff]  ;;  %v2775_v34 = vld [vmem:[%s3140_s4 + $0x8] sm:$0xff]  ;;  %v2782_v35 = vld [vmem:[%s3138_s2 + $0x18] sm:$0xff]  ;;  %vm470_vm3 = vcmask 7168  }
   0x7   :  { %2324 = vmatpush3.msra.mxu0 %v63_v3  ;;  %v2602_v12 = vld [vmem:[%s3144_s8] ss:$0 sm:$0xff]  ;;  %v2787_v36 = vld [vmem:[%s3140_s4 + $0x10] sm:$0xff]  ;;  %v2798_v37 = vld [vmem:[%s3140_s4 + $0x18] sm:$0xff]  ;;  %v2823_v46 = vstv %s444_s21  ;;  %vm2628_vm4 = vmmov 0   ;;  %vm965_vm5 = vcmask 516096  }
   0x8   :  { %2325 = vmatprep.subr.mxu0 %v62_v4  ;;  %v2731_v8 = vsub.s32 0, %v72_v7  ;;  %v2749_v26 = vld [vmem:[%s3138_s2] sm:$0xff]  ;;  %v395_v45 = vld [vmem:[%s3146_s10 + $0x8] sm:$0xff]  ;;  %v397_v63 = vld [vmem:[%s3146_s10 + $0x18] sm:$0xff]  ;;  %vm2103_vm6 = vcmask 257024   ;;  %vm2117_vm7 = vcmask 1043456  }
   0x9   :  { %2326 = vmatpush3.msra.mxu0 %v62_v4  ;;  %v2756_v27 = vld [vmem:[%s3140_s4] sm:$0xff]  ;;  %vm2131_vm8 = vcmask 0  }
   0xa   :  { %2328 = vmatmul.mubr.msk.f32.vlgmr.msra.gmra.mxu0 %vm76_vm0, %v2727_v5  ;;  %2334 = vmatprep.mubr.msk.f32.mxu1 %vm189_vm2, %v2756_v27  ;;  %v2807_v38 = vld [vmem:[%s3139_s3] sm:$0xff] }
   0xb   :  { %2344 = vmatprep.mubr.msk.f32.mxu0 %vm189_vm2, %v2749_v26  ;;  %v2603_v41 = vld [vmem:[%s3145_s9] ss:$0 sm:$0xff] }
   0xc   :  { %v394_v52 = vld [vmem:[%s3146_s10] sm:$0xff] }
  0x12   :  { %v2825_v51 = vpop.eup %2512 }
  0xca   :  { %v2329_v11 = vpop.f32.mrf.mxu0 }
  0xcb   :  { %v155_v13 = vadd.f32 %v2600_v9, %v2329_v11 }
  0xcc   :  { %v149_v14 = vpop.f32.mrf.mxu0 }
  0xcd   :  { %v159_v15 = vmax.f32 %v155_v13, 0.0  ;;  %v150_v16 = vadd.f32 %v2600_v9, %v149_v14 }
  0xcf   :  { %v158_v17 = vmax.f32 %v150_v16, 0.0  ;;  %v167_v18 = vmul.f32 %v2601_v10, %v159_v15  ;;  %v182_v21 = vmul.f32 %v2602_v12, %v159_v15 }
  0xd1   :  { %v172_v19 = vsel %vm168_vm1, %v167_v18, 0.0  ;;  %v166_v20 = vmul.f32 %v2601_v10, %v158_v17  ;;  %v181_v23 = vmul.f32 %v2602_v12, %v158_v17  ;;  %v186_v24 = vsel %vm168_vm1, %v182_v21, 0.0  ;;  %v396_v10 = vld [vmem:[%s3146_s10 + $0x10] sm:$0xff] }
  0xd2   :  { %173 = vadd.xlane.f32.xlu0 %v172_v19 }
  0xd3   :  { %v169_v22 = vsel %vm168_vm1, %v166_v20, 0.0  ;;  %v183_v25 = vsel %vm168_vm1, %v181_v23, 0.0 }
  0xd4   :  { %170 = vadd.xlane.f32.xlu1 %v169_v22 }
  0xd6   :  { %187 = vadd.xlane.f32.xlu0 %v186_v24 }
  0xd8   :  { %184 = vadd.xlane.f32.xlu1 %v183_v25 }
 0x15b   :  { %v174_v28 = vpop.xlane.xlu0 %173 }
 0x15c   :  { %2340 = vmatprep.subr.mxu0 %v174_v28 }
 0x15d   :  { %2341 = vmatpush3.msra.mxu0 %v174_v28  ;;  %v171_v29 = vpop.xlane.xlu1 %170 }
 0x15e   :  { %2342 = vmatprep.subr.mxu0 %v171_v29 }
 0x15f   :  { %v188_v32 = vpop.xlane.xlu0 %187  ;;  %2343 = vmatpush3.msra.mxu0 %v171_v29 }
 0x160   :  { %2330 = vmatprep.subr.mxu1 %v188_v32  ;;  %2345 = vmatmul.mubr.msk.f32.vlgmr.msra.gmra.mxu0 %vm189_vm2, %v2763_v30 }
 0x161   :  { %2331 = vmatpush3.msra.mxu1 %v188_v32  ;;  %v185_v33 = vpop.xlane.xlu1 %184  ;;  %2347 = vmatprep.mubr.msk.f32.mxu0 %vm189_vm2, %v2768_v31 }
 0x162   :  { %2332 = vmatprep.subr.mxu1 %v185_v33 }
 0x163   :  { %2333 = vmatpush3.msra.mxu1 %v185_v33 }
 0x164   :  { %2335 = vmatmul.mubr.msk.f32.vlgmr.msra.gmra.mxu1 %vm189_vm2, %v2775_v34  ;;  %2348 = vmatmul.mubr.msk.f32.gmra.mxu0 %vm189_vm2, %v2782_v35 }
 0x165   :  { %2337 = vmatprep.mubr.msk.f32.mxu1 %vm189_vm2, %v2787_v36  ;;  %2375 = vmatprep.mubr.msk.f32.mxu0 %vm189_vm2, %v2756_v27 }
 0x168   :  { %2338 = vmatmul.mubr.msk.f32.gmra.mxu1 %vm189_vm2, %v2798_v37 }
 0x169   :  { %2358 = vmatprep.mubr.msk.f32.mxu1 %vm76_vm0, %v2807_v38 }
 0x220   :  { %v2346_v40 = vpop.f32.mrf.mxu0 }
 0x222   :  { %v365_v42 = vpop.f32.mrf.mxu0 }
 0x224   :  { %v2336_v43 = vpop.f32.mrf.mxu1  ;;  %v2349_v50 = vpop.f32.mrf.mxu0 }
 0x225   :  { %v371_v44 = vadd.f32 %v2346_v40, %v2336_v43 }
 0x226   :  { %v268_v47 = vpop.f32.mrf.mxu1  ;;  %v375_v0 = vpop.f32.mrf.mxu0 }
 0x227   :  { %v391_v48 = vadd.f32 %v2603_v41, %v371_v44  ;;  %v366_v49 = vadd.f32 %v365_v42, %v268_v47 }
 0x228   :  { %v2339_v53 = vpop.f32.mrf.mxu1 }
 0x229   :  { %v399_v54 = vadd.f32 %v395_v45, %v391_v48  ;;  %v447_v55 = vsub.f32 %v391_v48, %v2823_v46  ;;  %v390_v56 = vadd.f32 %v2603_v41, %v366_v49  ;;  %v381_v57 = vadd.f32 %v2349_v50, %v2339_v53 }
 0x22a   :  { %v278_v58 = vpop.f32.mrf.mxu1 }
 0x22b   :  { %v405_v59 = vmul.f32 %v2825_v51, %v399_v54  ;;  %v451_v60 = vsub.f32 0.0, %v447_v55  ;;  %v398_v61 = vadd.f32 %v394_v52, %v390_v56  ;;  %v446_v62 = vsub.f32 %v390_v56, %v2823_v46 }
 0x22c   :  { %v393_v1 = vadd.f32 %v2603_v41, %v381_v57  ;;  %v376_v3 = vadd.f32 %v375_v0, %v278_v58 }
 0x22d   :  { %v409_v4 = vsub.f32 0.0, %v405_v59  ;;  %v456_v6 = vmul.f32 1.442695, %v451_v60  ;;  %v404_v7 = vmul.f32 %v2825_v51, %v398_v61  ;;  %v450_v9 = vsub.f32 0.0, %v446_v62 }
 0x22e   :  { %v401_v11 = vadd.f32 %v397_v63, %v393_v1  ;;  %v449_v12 = vsub.f32 %v393_v1, %v2823_v46  ;;  %v392_v13 = vadd.f32 %v2603_v41, %v376_v3 }
 0x22f   :  { %v414_v14 = vmul.f32 1.442695, %v409_v4  ;;  %2514 = vpow2.f32 %v456_v6  ;;  %v408_v15 = vsub.f32 0.0, %v404_v7  ;;  %v454_v16 = vmul.f32 1.442695, %v450_v9 }
 0x230   :  { %v407_v17 = vmul.f32 %v2825_v51, %v401_v11  ;;  %v453_v18 = vsub.f32 0.0, %v449_v12  ;;  %v400_v19 = vadd.f32 %v396_v10, %v392_v13  ;;  %v448_v20 = vsub.f32 %v392_v13, %v2823_v46 }
 0x231   :  { %2516 = vpow2.f32 %v414_v14  ;;  %v412_v21 = vmul.f32 1.442695, %v408_v15 }
 0x232   :  { %2518 = vpow2.f32 %v454_v16  ;;  %v411_v22 = vsub.f32 0.0, %v407_v17  ;;  %v460_v23 = vmul.f32 1.442695, %v453_v18  ;;  %v406_v24 = vmul.f32 %v2825_v51, %v400_v19 }
 0x233   :  { %2520 = vpow2.f32 %v412_v21  ;;  %v452_v25 = vsub.f32 0.0, %v448_v20 }
 0x234   :  { %v418_v28 = vmul.f32 1.442695, %v411_v22  ;;  %2522 = vpow2.f32 %v460_v23  ;;  %v410_v29 = vsub.f32 0.0, %v406_v24 }
 0x235   :  { %v458_v32 = vmul.f32 1.442695, %v452_v25 }
 0x236   :  { %2524 = vpow2.f32 %v418_v28  ;;  %v416_v33 = vmul.f32 1.442695, %v410_v29  ;;  %v2861_v29 = vld [vmem:[%s3139_s3 + $0x8] sm:$0xff] }
 0x237   :  { %2526 = vpow2.f32 %v458_v32 }
 0x238   :  { %2528 = vpow2.f32 %v416_v33 }
 0x23c   :  { %v2515_v39 = vpop.eup %2514 }
 0x23d   :  { %v463_v40 = vadd.f32 1.0, %v2515_v39 }
 0x23e   :  { %v2517_v41 = vpop.eup %2516 }
 0x23f   :  { %v2519_v42 = vpop.eup %2518  ;;  %v421_v43 = vadd.f32 1.0, %v2517_v41  ;;  %2530 = vrcp.f32 %v463_v40 }
 0x240   :  { %v2521_v44 = vpop.eup %2520  ;;  %v462_v45 = vadd.f32 1.0, %v2519_v42 }
 0x241   :  { %v2523_v47 = vpop.eup %2522  ;;  %2532 = vrcp.f32 %v421_v43  ;;  %v420_v48 = vadd.f32 1.0, %v2521_v44 }
 0x242   :  { %2534 = vrcp.f32 %v462_v45  ;;  %v465_v49 = vadd.f32 1.0, %v2523_v47 }
 0x243   :  { %v2525_v50 = vpop.eup %2524  ;;  %2536 = vrcp.f32 %v420_v48 }
 0x244   :  { %v2527_v52 = vpop.eup %2526  ;;  %v423_v53 = vadd.f32 1.0, %v2525_v50  ;;  %2538 = vrcp.f32 %v465_v49 }
 0x245   :  { %v2529_v54 = vpop.eup %2528  ;;  %v464_v55 = vadd.f32 1.0, %v2527_v52 }
 0x246   :  { %2540 = vrcp.f32 %v423_v53  ;;  %v422_v56 = vadd.f32 1.0, %v2529_v54 }
 0x247   :  { %2542 = vrcp.f32 %v464_v55 }
 0x248   :  { %2544 = vrcp.f32 %v422_v56 }
 0x24c   :  { %v2531_v57 = vpop.eup %2530 }
 0x24d   :  { %v472_v61 = vsel %vm470_vm3, %v2531_v57, 0.0 }
 0x24e   :  { %v2533_v58 = vpop.eup %2532 }
 0x24f   :  { %v2535_v59 = vpop.eup %2534  ;;  %v429_v1 = vmul.f32 1.5, %v2533_v58 }
 0x250   :  { %v471_v60 = vsel %vm470_vm3, %v2535_v59, 0.0  ;;  %v2537_v62 = vpop.eup %2536 }
 0x251   :  { %v473_v63 = vadd.f32 %v472_v61, %v471_v60  ;;  %v2539_v0 = vpop.eup %2538  ;;  %v428_v7 = vmul.f32 1.5, %v2537_v62  ;;  %v433_v13 = vadd.f32 -0.45, %v429_v1  ;;  %v2903_v1 = vld [vmem:[%s3141_s5 + $0x30] sm:$0xff] }
 0x252   :  { %v476_v15 = vsel %vm470_vm3, %v2539_v0, 0.0  ;;  %v2898_v0 = vld [vmem:[%s3141_s5 + $0x38] sm:$0xff] }
 0x253   :  { %v2541_v3 = vpop.eup %2540  ;;  %v432_v18 = vadd.f32 -0.45, %v428_v7  ;;  %v437_v22 = vmax.f32 %v433_v13, 0.0 }
 0x254   :  { %v2543_v4 = vpop.eup %2542  ;;  %v431_v6 = vmul.f32 1.5, %v2541_v3 }
 0x255   :  { %v2545_v9 = vpop.eup %2544  ;;  %v474_v10 = vsel %vm470_vm3, %v2543_v4, 0.0  ;;  %v436_v24 = vmax.f32 %v432_v18, 0.0  ;;  %v441_v25 = vmin.f32 %v437_v22, 1.0  ;;  %v2923_v18 = vld [vmem:[%s3141_s5 + $0x20] sm:$0xff] }
 0x256   :  { %v435_v11 = vadd.f32 -0.45, %v431_v6  ;;  %v430_v12 = vmul.f32 1.5, %v2545_v9  ;;  %v475_v14 = vadd.f32 %v474_v10, %v473_v63  ;;  %v2940_v22 = vld [vmem:[%s3142_s6 + $0x1] sm:$0x1] }
 0x257   :  { %v440_v28 = vmin.f32 %v436_v24, 1.0  ;;  %v2947_v24 = vld [vmem:[%s3144_s8 + $0x1] sm:$0x1] }
 0x258   :  { %v439_v16 = vmax.f32 %v435_v11, 0.0  ;;  %v434_v17 = vadd.f32 -0.45, %v430_v12  ;;  %v2848_v19 = vadd.f32 %v476_v15, %v475_v14 }
 0x25a   :  { %v2850_v20 = vmin.f32 %v439_v16, 1.0  ;;  %v438_v21 = vmax.f32 %v434_v17, 0.0  ;;  %v2916_v17 = vld [vmem:[%s3141_s5 + $0x28] sm:$0xff] }
 0x25c   :  { %2350 = vmatprep.subr.mxu1 %v2850_v20  ;;  %v2853_v23 = vmin.f32 %v438_v21, 1.0 }
 0x25d   :  { %2351 = vmatpush3.msra.mxu1 %v2850_v20 }
 0x25e   :  { %2352 = vmatprep.subr.mxu1 %v2853_v23 }
 0x25f   :  { %2353 = vmatpush3.msra.mxu1 %v2853_v23 }
 0x260   :  { %2354 = vmatprep.subr.mxu1 %v441_v25 }
 0x261   :  { %2355 = vmatpush3.msra.mxu1 %v441_v25 }
 0x262   :  { %2356 = vmatprep.subr.mxu1 %v440_v28 }
 0x263   :  { %2357 = vmatpush3.msra.mxu1 %v440_v28 }
 0x264   :  { %2359 = vmatmul.mubr.msk.f32.vlgmr.msra.gmra.mxu1 %vm76_vm0, %v2861_v29 }
 0x265   :  { %2365 = vmatprep.mubr.msk.f32.mxu1 %vm189_vm2, %v2749_v26 }
 0x324   :  { %v2360_v32 = vpop.f32.mrf.mxu1 }
 0x325   :  { %v565_v33 = vadd.f32 1e-06, %v2360_v32 }
 0x326   :  { %v559_v39 = vpop.f32.mrf.mxu1 }
 0x327   :  { %2546 = vrsqrt.f32 %v565_v33  ;;  %v560_v40 = vadd.f32 1e-06, %v559_v39  ;;  %v1107_v33 = vrot.slane %v2947_v24, %v2731_v8 }
 0x329   :  { %2548 = vrsqrt.f32 %v560_v40 }
 0x334   :  { %v2547_v41 = vpop.eup %2546 }
 0x335   :  { %v571_v42 = vmax.f32 %v2547_v41, 0.0 }
 0x336   :  { %v2549_v43 = vpop.eup %2548 }
 0x337   :  { %v573_v44 = vmin.f32 %v571_v42, 10.0  ;;  %v570_v45 = vmax.f32 %v2549_v43, 0.0 }
 0x339   :  { %v572_v47 = vmin.f32 %v570_v45, 10.0  ;;  %2361 = vmatprep.subr.mxu1 %v573_v44  ;;  %2371 = vmatprep.subr.mxu0 %v573_v44 }
 0x33a   :  { %2362 = vmatpush3.msra.mxu1 %v573_v44  ;;  %2372 = vmatpush3.msra.mxu0 %v573_v44 }
 0x33b   :  { %2363 = vmatprep.subr.mxu1 %v572_v47  ;;  %2373 = vmatprep.subr.mxu0 %v572_v47 }
 0x33c   :  { %2364 = vmatpush3.msra.mxu1 %v572_v47  ;;  %2374 = vmatpush3.msra.mxu0 %v572_v47 }
 0x33d   :  { %2366 = vmatmul.mubr.msk.f32.vlgmr.msra.gmra.mxu1 %vm189_vm2, %v2763_v30  ;;  %2376 = vmatmul.mubr.msk.f32.vlgmr.msra.gmra.mxu0 %vm189_vm2, %v2775_v34 }
 0x33e   :  { %2368 = vmatprep.mubr.msk.f32.mxu1 %vm189_vm2, %v2768_v31  ;;  %2378 = vmatprep.mubr.msk.f32.mxu0 %vm189_vm2, %v2787_v36 }
 0x33f   :  { %2381 = vmatprep.subr.mxu1 %v2727_v5 }
 0x340   :  { %2382 = vmatpush3.msra.mxu1 %v2727_v5  ;;  %v2626_v5 = vmov 0  }
 0x341   :  { %2369 = vmatmul.mubr.msk.f32.gmra.mxu1 %vm189_vm2, %v2782_v35  ;;  %2379 = vmatmul.mubr.msk.f32.gmra.mxu0 %vm189_vm2, %v2798_v37 }
 0x342   :  { %2383 = vmatprep.subr.mxu1 %v2714_v2  ;;  %2385 = vmatprep.mubr.msk.f32.mxu1 %vm189_vm2, %v2756_v27 }
 0x343   :  { %2384 = vmatpush3.msra.mxu1 %v2714_v2  ;;  %2399 = vmatprep.mubr.msk.f32.mxu0 %vm76_vm0, %v2807_v38 }
 0x344   :  { %2511 = vset.pattern.permute.xlu1 %v2626_v5  ;;  %2510 = vset.pattern.permute.xlu0 %v2626_v5 }
 0x345   :  { %2386 = vmatmul.mubr.msk.f32.vlgmr.msra.gmra.mxu1 %vm189_vm2, %v2775_v34  ;;  %2402 = vmatprep.subr.mxu1 %v2898_v0 }
 0x346   :  { %2388 = vmatprep.mubr.msk.f32.mxu1 %vm189_vm2, %v2787_v36  ;;  %2403 = vmatpush3.msra.mxu1 %v2898_v0 }
 0x347   :  { %2404 = vmatprep.subr.mxu1 %v2903_v1 }
 0x348   :  { %2405 = vmatpush3.msra.mxu1 %v2903_v1 }
 0x349   :  { %2389 = vmatmul.mubr.msk.f32.gmra.mxu1 %vm189_vm2, %v2798_v37  ;;  %2406 = vmatprep.subr.mxu1 %v2916_v17 }
 0x34a   :  { %2407 = vmatpush3.msra.mxu1 %v2916_v17 }
 0x34b   :  { %2408 = vmatprep.subr.mxu1 %v2923_v18 }
 0x34c   :  { %2409 = vmatpush3.msra.mxu1 %v2923_v18 }
 0x3fd   :  { %v2367_v48 = vpop.f32.mrf.mxu1  ;;  %v2377_v49 = vpop.f32.mrf.mxu0 }
 0x3fe   :  { %v660_v50 = vmul.f32 %v2367_v48, %v441_v25  ;;  %v2952_v25 = vld [vmem:[%s3143_s7 + $0x1] sm:$0x1] }
 0x3ff   :  { %v640_v52 = vpop.f32.mrf.mxu1  ;;  %v729_v2 = vpop.f32.mrf.mxu0  ;;  %v1093_v39 = vrot.slane %v2952_v25, %v2731_v8 }
 0x400   :  { %v749_v53 = vmul.f32 %v2377_v49, %v660_v50  ;;  %v659_v61 = vmul.f32 %v640_v52, %v440_v28 }
 0x401   :  { %v2370_v54 = vpop.f32.mrf.mxu1  ;;  %v2380_v55 = vpop.f32.mrf.mxu0 }
 0x402   :  { %v662_v56 = vmul.f32 %v2370_v54, %v2850_v20  ;;  %844 = vperm.xlu1 %2511, %v749_v53   ;;  %v748_v63 = vmul.f32 %v729_v2, %v659_v61 }
 0x403   :  { %v650_v57 = vpop.f32.mrf.mxu1  ;;  %v739_v60 = vpop.f32.mrf.mxu0 }
 0x404   :  { %v751_v58 = vmul.f32 %v2380_v55, %v662_v56  ;;  %v661_v59 = vmul.f32 %v650_v57, %v2853_v23  ;;  %v1004_v23 = vrot.slane %v2940_v22, %v2731_v8  ;;  %v2981_v57 = vld [vmem:[%s3145_s9 + $0x1] sm:$0x1] }
 0x405   :  { %v2387_v3 = vpop.f32.mrf.mxu1 }
 0x406   :  { %v750_v62 = vmul.f32 %v739_v60, %v661_v59  ;;  %854 = vperm.xlu0 %2510, %v751_v58   ;;  %v1291_v58 = vrot.slane %v2981_v57, %v2731_v8 }
 0x407   :  { %v818_v4 = vpop.f32.mrf.mxu1 }
 0x408   :  { %849 = vperm.xlu1 %2511, %v750_v62   ;;  %v2192_v62 = vld [vmem:[%s3146_s10 + $0x28] sm:$0xff] }
 0x409   :  { %v2390_v7 = vpop.f32.mrf.mxu1 }
 0x40b   :  { %v828_v11 = vpop.f32.mrf.mxu1 }
 0x40c   :  { %839 = vperm.xlu1 %2511, %v748_v63  }
 0x47d   :  { %v845_v6 = vpop.permute.xlu1 %844 }
 0x47e   :  { %v858_v14 = vmul.f32 %v2387_v3, %v845_v6 }
 0x481   :  { %v855_v9 = vpop.permute.xlu0 %854 }
 0x482   :  { %v860_v10 = vmul.f32 %v2390_v7, %v855_v9  ;;  %v2191_v7 = vld [vmem:[%s3146_s10 + $0x20] sm:$0xff] }
 0x483   :  { %v850_v12 = vpop.permute.xlu1 %849 }
 0x484   :  { %v859_v13 = vmul.f32 %v850_v12, %v828_v11  ;;  %2391 = vmatprep.subr.mxu0 %v860_v10 }
 0x485   :  { %2392 = vmatpush3.msra.mxu0 %v860_v10 }
 0x486   :  { %2393 = vmatprep.subr.mxu0 %v859_v13 }
 0x487   :  { %2394 = vmatpush3.msra.mxu0 %v859_v13  ;;  %v840_v15 = vpop.permute.xlu1 %839 }
 0x488   :  { %v857_v16 = vmul.f32 %v840_v15, %v818_v4  ;;  %2395 = vmatprep.subr.mxu0 %v858_v14 }
 0x489   :  { %2396 = vmatpush3.msra.mxu0 %v858_v14 }
 0x48a   :  { %2397 = vmatprep.subr.mxu0 %v857_v16 }
 0x48b   :  { %2398 = vmatpush3.msra.mxu0 %v857_v16 }
 0x48c   :  { %2400 = vmatmul.mubr.msk.f32.vlgmr.msra.gmra.mxu0 %vm76_vm0, %v2861_v29 }
 0x48d   :  { %2417 = vmatprep.mubr.msk.f32.mxu0 %vm189_vm2, %v2756_v27 }
 0x54c   :  { %v2927_v20 = vpop.f32.mrf.mxu0 }
 0x54e   :  { %v2929_v21 = vpop.f32.mrf.mxu0 }
 0x54f   :  { %2410 = vmatprep.mubr.msk.f32.mxu1 %vm76_vm0, %v2929_v21 }
 0x550   :  { %2411 = vmatmul.mubr.msk.f32.vlgmr.msra.gmra.mxu1 %vm76_vm0, %v2927_v20 }
 0x551   :  { %2427 = vmatprep.mubr.msk.f32.mxu1 %vm189_vm2, %v2749_v26 }
 0x610   :  { %v2412_v28 = vpop.f32.mrf.mxu1 }
 0x611   :  { %v1084_v32 = vadd.f32 %v2412_v28, %v1004_v23  ;;  %v2194_v28 = vld [vmem:[%s3146_s10 + $0x38] sm:$0xff] }
 0x612   :  { %v1078_v40 = vpop.f32.mrf.mxu1 }
 0x613   :  { %v1088_v41 = vmax.f32 %v1084_v32, 0.0  ;;  %v1079_v42 = vadd.f32 %v1078_v40, %v1004_v23 }
 0x615   :  { %v1087_v43 = vmax.f32 %v1079_v42, 0.0  ;;  %v1110_v44 = vmul.f32 %v1107_v33, %v1088_v41  ;;  %v1096_v45 = vmul.f32 %v1093_v39, %v1088_v41 }
 0x617   :  { %v1114_v47 = vsel %vm168_vm1, %v1110_v44, 0.0  ;;  %v1100_v5 = vsel %vm168_vm1, %v1096_v45, 0.0  ;;  %v1095_v48 = vmul.f32 %v1093_v39, %v1087_v43  ;;  %v1109_v50 = vmul.f32 %v1107_v33, %v1087_v43  ;;  %v2193_v44 = vld [vmem:[%s3146_s10 + $0x30] sm:$0xff] }
 0x618   :  { %1115 = vadd.xlane.f32.xlu0 %v1114_v47  ;;  %1101 = vadd.xlane.f32.xlu1 %v1100_v5 }
 0x619   :  { %v1097_v49 = vsel %vm168_vm1, %v1095_v48, 0.0  ;;  %v1111_v52 = vsel %vm168_vm1, %v1109_v50, 0.0 }
 0x61c   :  { %1098 = vadd.xlane.f32.xlu1 %v1097_v49 }
 0x620   :  { %1112 = vadd.xlane.f32.xlu1 %v1111_v52 }
 0x6a1   :  { %v1116_v2 = vpop.xlane.xlu0 %1115  ;;  %v1102_v53 = vpop.xlane.xlu1 %1101 }
 0x6a2   :  { %2413 = vmatprep.subr.mxu0 %v1116_v2  ;;  %2423 = vmatprep.subr.mxu1 %v1102_v53 }
 0x6a3   :  { %2414 = vmatpush3.msra.mxu0 %v1116_v2  ;;  %2424 = vmatpush3.msra.mxu1 %v1102_v53 }
 0x6a5   :  { %v1099_v54 = vpop.xlane.xlu1 %1098 }
 0x6a6   :  { %2425 = vmatprep.subr.mxu1 %v1099_v54 }
 0x6a7   :  { %2426 = vmatpush3.msra.mxu1 %v1099_v54 }
 0x6a8   :  { %2428 = vmatmul.mubr.msk.f32.vlgmr.msra.gmra.mxu1 %vm189_vm2, %v2763_v30 }
 0x6a9   :  { %v1113_v55 = vpop.xlane.xlu1 %1112  ;;  %2430 = vmatprep.mubr.msk.f32.mxu1 %vm189_vm2, %v2768_v31 }
 0x6aa   :  { %2415 = vmatprep.subr.mxu0 %v1113_v55 }
 0x6ab   :  { %2416 = vmatpush3.msra.mxu0 %v1113_v55 }
 0x6ac   :  { %2418 = vmatmul.mubr.msk.f32.vlgmr.msra.gmra.mxu0 %vm189_vm2, %v2775_v34  ;;  %2431 = vmatmul.mubr.msk.f32.gmra.mxu1 %vm189_vm2, %v2782_v35 }
 0x6ad   :  { %2420 = vmatprep.mubr.msk.f32.mxu0 %vm189_vm2, %v2787_v36  ;;  %2458 = vmatprep.mubr.msk.f32.mxu1 %vm189_vm2, %v2756_v27 }
 0x6b0   :  { %2421 = vmatmul.mubr.msk.f32.gmra.mxu0 %vm189_vm2, %v2798_v37 }
 0x6b1   :  { %2441 = vmatprep.mubr.msk.f32.mxu0 %vm76_vm0, %v2807_v38 }
 0x768   :  { %v2429_v56 = vpop.f32.mrf.mxu1 }
 0x76a   :  { %v1268_v59 = vpop.f32.mrf.mxu1 }
 0x76c   :  { %v2419_v60 = vpop.f32.mrf.mxu0  ;;  %v2432_v6 = vpop.f32.mrf.mxu1 }
 0x76d   :  { %v1274_v61 = vadd.f32 %v2429_v56, %v2419_v60 }
 0x76e   :  { %v1183_v63 = vpop.f32.mrf.mxu0  ;;  %v1278_v32 = vpop.f32.mrf.mxu1 }
 0x76f   :  { %v1294_v3 = vadd.f32 %v1291_v58, %v1274_v61  ;;  %v1269_v4 = vadd.f32 %v1268_v59, %v1183_v63 }
 0x770   :  { %v2422_v9 = vpop.f32.mrf.mxu0 }
 0x771   :  { %v1303_v10 = vadd.f32 %v2192_v62, %v1294_v3  ;;  %v1347_v11 = vsub.f32 %v1294_v3, %v2823_v46  ;;  %v1293_v8 = vadd.f32 %v1291_v58, %v1269_v4  ;;  %v1284_v12 = vadd.f32 %v2432_v6, %v2422_v9 }
 0x772   :  { %v1193_v13 = vpop.f32.mrf.mxu0 }
 0x773   :  { %v1307_v14 = vmul.f32 %v2825_v51, %v1303_v10  ;;  %v1351_v15 = vsub.f32 0.0, %v1347_v11  ;;  %v1302_v16 = vadd.f32 %v2191_v7, %v1293_v8  ;;  %v1346_v23 = vsub.f32 %v1293_v8, %v2823_v46 }
 0x774   :  { %v1296_v33 = vadd.f32 %v1291_v58, %v1284_v12  ;;  %v1279_v39 = vadd.f32 %v1278_v32, %v1193_v13 }
 0x775   :  { %v1311_v40 = vsub.f32 0.0, %v1307_v14  ;;  %v1356_v41 = vmul.f32 1.442695, %v1351_v15  ;;  %v1306_v42 = vmul.f32 %v2825_v51, %v1302_v16  ;;  %v1350_v43 = vsub.f32 0.0, %v1346_v23 }
 0x776   :  { %v1305_v45 = vadd.f32 %v2194_v28, %v1296_v33  ;;  %v1349_v47 = vsub.f32 %v1296_v33, %v2823_v46  ;;  %v1295_v5 = vadd.f32 %v1291_v58, %v1279_v39  ;;  %v478_v33 = vrot.slane %v2848_v19, 4 }
 0x777   :  { %v1316_v48 = vmul.f32 1.442695, %v1311_v40  ;;  %2550 = vpow2.f32 %v1356_v41  ;;  %v1310_v49 = vsub.f32 0.0, %v1306_v42  ;;  %v1354_v50 = vmul.f32 1.442695, %v1350_v43 }
 0x778   :  { %v1309_v52 = vmul.f32 %v2825_v51, %v1305_v45  ;;  %v1353_v2 = vsub.f32 0.0, %v1349_v47  ;;  %v1304_v53 = vadd.f32 %v2193_v44, %v1295_v5  ;;  %v1348_v54 = vsub.f32 %v1295_v5, %v2823_v46 }
 0x779   :  { %2552 = vpow2.f32 %v1316_v48  ;;  %v1314_v55 = vmul.f32 1.442695, %v1310_v49  ;;  %v479_v44 = vadd.f32 %v478_v33, %v2848_v19 }
 0x77a   :  { %2554 = vpow2.f32 %v1354_v50  ;;  %v1313_v56 = vsub.f32 0.0, %v1309_v52  ;;  %v1360_v59 = vmul.f32 1.442695, %v1353_v2  ;;  %v1308_v60 = vmul.f32 %v2825_v51, %v1304_v53 }
 0x77b   :  { %2556 = vpow2.f32 %v1314_v55  ;;  %v1352_v61 = vsub.f32 0.0, %v1348_v54  ;;  %v480_v53 = vrot.slane %v479_v44, 2 }
 0x77c   :  { %v1320_v58 = vmul.f32 1.442695, %v1313_v56  ;;  %2558 = vpow2.f32 %v1360_v59  ;;  %v1312_v62 = vsub.f32 0.0, %v1308_v60 }
 0x77d   :  { %v1358_v63 = vmul.f32 1.442695, %v1352_v61 }
 0x77e   :  { %2560 = vpow2.f32 %v1320_v58  ;;  %v1318_v3 = vmul.f32 1.442695, %v1312_v62 }
 0x77f   :  { %2562 = vpow2.f32 %v1358_v63 }
 0x780   :  { %2564 = vpow2.f32 %v1318_v3  ;;  %v481_v3 = vadd.f32 %v480_v53, %v479_v44 }
 0x784   :  { %v2551_v4 = vpop.eup %2550 }
 0x785   :  { %v1363_v6 = vadd.f32 1.0, %v2551_v4 }
 0x786   :  { %v2553_v46 = vpop.eup %2552 }
 0x787   :  { %v2555_v7 = vpop.eup %2554  ;;  %v1323_v9 = vadd.f32 1.0, %v2553_v46  ;;  %2566 = vrcp.f32 %v1363_v6 }
 0x788   :  { %v2557_v10 = vpop.eup %2556  ;;  %v1362_v11 = vadd.f32 1.0, %v2555_v7 }
 0x789   :  { %v2559_v8 = vpop.eup %2558  ;;  %2568 = vrcp.f32 %v1323_v9  ;;  %v1322_v51 = vadd.f32 1.0, %v2557_v10 }
 0x78a   :  { %2570 = vrcp.f32 %v1362_v11  ;;  %v1365_v12 = vadd.f32 1.0, %v2559_v8 }
 0x78b   :  { %v2561_v13 = vpop.eup %2560  ;;  %2572 = vrcp.f32 %v1322_v51  ;;  %v482_v51 = vrot.slane %v481_v3, 1 }
 0x78c   :  { %v2563_v14 = vpop.eup %2562  ;;  %v1325_v15 = vadd.f32 1.0, %v2561_v13  ;;  %2574 = vrcp.f32 %v1365_v12 }
 0x78d   :  { %v2565_v16 = vpop.eup %2564  ;;  %v1364_v23 = vadd.f32 1.0, %v2563_v14 }
 0x78e   :  { %2576 = vrcp.f32 %v1325_v15  ;;  %v1324_v28 = vadd.f32 1.0, %v2565_v16  ;;  %v483_v15 = vadd.f32 %v482_v51, %v481_v3 }
 0x78f   :  { %2578 = vrcp.f32 %v1364_v23 }
 0x790   :  { %2580 = vrcp.f32 %v1324_v28  ;;  %v485_v28 = vmul.f32 0.03125, %v483_v15  ;;  %v2592_v15 = vld [vmem:[%s3141_s5] sm:$0xff] }
 0x794   :  { %v2567_v32 = vpop.eup %2566 }
 0x795   :  { %v1371_v42 = vsel %vm470_vm3, %v2567_v32, 0.0 }
 0x796   :  { %v2569_v39 = vpop.eup %2568 }
 0x797   :  { %v2571_v40 = vpop.eup %2570  ;;  %v1331_v5 = vmul.f32 1.5, %v2569_v39 }
 0x798   :  { %v1370_v41 = vsel %vm470_vm3, %v2571_v40, 0.0  ;;  %v2573_v43 = vpop.eup %2572 }
 0x799   :  { %v1372_v45 = vadd.f32 %v1371_v42, %v1370_v41  ;;  %v2575_v47 = vpop.eup %2574  ;;  %v1330_v52 = vmul.f32 1.5, %v2573_v43  ;;  %v1335_v59 = vadd.f32 -0.45, %v1331_v5 }
 0x79a   :  { %v1375_v61 = vsel %vm470_vm3, %v2575_v47, 0.0 }
 0x79b   :  { %v2577_v48 = vpop.eup %2576  ;;  %v1334_v19 = vadd.f32 -0.45, %v1330_v52  ;;  %v1339_v46 = vmax.f32 %v1335_v59, 0.0 }
 0x79c   :  { %v2579_v49 = vpop.eup %2578  ;;  %v1333_v50 = vmul.f32 1.5, %v2577_v48 }
 0x79d   :  { %v2581_v2 = vpop.eup %2580  ;;  %v1373_v54 = vsel %vm470_vm3, %v2579_v49, 0.0  ;;  %v1338_v10 = vmax.f32 %v1334_v19, 0.0  ;;  %v1343_v8 = vmin.f32 %v1339_v46, 1.0 }
 0x79e   :  { %v1337_v55 = vadd.f32 -0.45, %v1333_v50  ;;  %v1332_v56 = vmul.f32 1.5, %v2581_v2  ;;  %v1374_v60 = vadd.f32 %v1373_v54, %v1372_v45 }
 0x79f   :  { %v1342_v13 = vmin.f32 %v1338_v10, 1.0 }
 0x7a0   :  { %v1341_v58 = vmax.f32 %v1337_v55, 0.0  ;;  %v1336_v62 = vadd.f32 -0.45, %v1332_v56  ;;  %v1376_v63 = vadd.f32 %v1375_v61, %v1374_v60 }
 0x7a2   :  { %v3011_v4 = vmin.f32 %v1341_v58, 1.0  ;;  %v1340_v6 = vmax.f32 %v1336_v62, 0.0  ;;  %v1377_v7 = vrot.slane %v1376_v63, 4 }
 0x7a4   :  { %2433 = vmatprep.subr.mxu0 %v3011_v4  ;;  %v3014_v9 = vmin.f32 %v1340_v6, 1.0  ;;  %v1378_v11 = vadd.f32 %v1377_v7, %v1376_v63  ;;  %v2627_v7 = vmov 0.0  }
 0x7a5   :  { %2434 = vmatpush3.msra.mxu0 %v3011_v4 }
 0x7a6   :  { %2435 = vmatprep.subr.mxu0 %v3014_v9  ;;  %v1379_v12 = vrot.slane %v1378_v11, 2 }
 0x7a7   :  { %2436 = vmatpush3.msra.mxu0 %v3014_v9 }
 0x7a8   :  { %2437 = vmatprep.subr.mxu0 %v1343_v8  ;;  %v1380_v14 = vadd.f32 %v1379_v12, %v1378_v11 }
 0x7a9   :  { %2438 = vmatpush3.msra.mxu0 %v1343_v8 }
 0x7aa   :  { %2439 = vmatprep.subr.mxu0 %v1342_v13  ;;  %v1381_v16 = vrot.slane %v1380_v14, 1 }
 0x7ab   :  { %2440 = vmatpush3.msra.mxu0 %v1342_v13 }
 0x7ac   :  { %2442 = vmatmul.mubr.msk.f32.vlgmr.msra.gmra.mxu0 %vm76_vm0, %v2861_v29  ;;  %v1382_v23 = vadd.f32 %v1381_v16, %v1380_v14  ;;  %v1878_v14 = vld [vmem:[%s3147_s11] sm:$0xf]  ;;  %v938_v16 = vmul.f32 %v2592_v15, %v2592_v15 }
 0x7ad   :  { %2448 = vmatprep.mubr.msk.f32.mxu0 %vm189_vm2, %v2749_v26 }
 0x7ae   :  { %v1383_v32 = vmul.f32 0.03125, %v1382_v23  ;;  %v2593_v23 = vld [vmem:[%s3141_s5 + $0x8] sm:$0xff] }
 0x7b0   :  { %v3023_v33 = vadd.f32 %v1383_v32, %v485_v28  ;;  %v939_v28 = vmul.f32 %v2593_v23, %v2593_v23  ;;  %v942_v32 = vsel %vm168_vm1, %v938_v16, 0.0 }
 0x86c   :  { %v2443_v39 = vpop.f32.mrf.mxu0 }
 0x86d   :  { %v1457_v40 = vadd.f32 1e-06, %v2443_v39  ;;  %v945_v39 = vsel %vm168_vm1, %v939_v28, 0.0 }
 0x86e   :  { %v1451_v41 = vpop.f32.mrf.mxu0 }
 0x86f   :  { %2582 = vrsqrt.f32 %v1457_v40  ;;  %v1452_v42 = vadd.f32 1e-06, %v1451_v41  ;;  %v2594_v40 = vld [vmem:[%s3141_s5 + $0x18] sm:$0xff] }
 0x870   :  { %v941_v41 = vmul.f32 %v2594_v40, %v2594_v40 }
 0x871   :  { %2584 = vrsqrt.f32 %v1452_v42 }
 0x872   :  { %v951_v42 = vsel %vm168_vm1, %v941_v41, 0.0 }
 0x87c   :  { %v2583_v43 = vpop.eup %2582 }
 0x87d   :  { %v1463_v44 = vmax.f32 %v2583_v43, 0.0  ;;  %v1831_v43 = vmul.f32 %v2916_v17, %v2916_v17  ;;  %v1856_v17 = vmul.f32 %v2940_v22, %v2940_v22 }
 0x87e   :  { %v2585_v45 = vpop.eup %2584 }
 0x87f   :  { %v1465_v47 = vmin.f32 %v1463_v44, 10.0  ;;  %v1462_v5 = vmax.f32 %v2585_v45, 0.0  ;;  %v1837_v44 = vsel %vm168_vm1, %v1831_v43, 0.0  ;;  %v1833_v45 = vmul.f32 %v2898_v0, %v2898_v0 }
 0x880   :  { %v1868_v0 = vmul.f32 %v2947_v24, %v2947_v24 }
 0x881   :  { %v1464_v48 = vmin.f32 %v1462_v5, 10.0  ;;  %2444 = vmatprep.subr.mxu0 %v1465_v47  ;;  %2454 = vmatprep.subr.mxu1 %v1465_v47  ;;  %v2595_v5 = vld [vmem:[%s3143_s7] sm:$0x1] }
 0x882   :  { %2445 = vmatpush3.msra.mxu0 %v1465_v47  ;;  %2455 = vmatpush3.msra.mxu1 %v1465_v47  ;;  %v1843_v47 = vsel %vm168_vm1, %v1833_v45, 0.0 }
 0x883   :  { %2446 = vmatprep.subr.mxu0 %v1464_v48  ;;  %2456 = vmatprep.subr.mxu1 %v1464_v48 }
 0x884   :  { %2447 = vmatpush3.msra.mxu0 %v1464_v48  ;;  %2457 = vmatpush3.msra.mxu1 %v1464_v48  ;;  %v971_v48 = vmul.f32 %v2595_v5, %v2595_v5 }
 0x885   :  { %2449 = vmatmul.mubr.msk.f32.vlgmr.msra.gmra.mxu0 %vm189_vm2, %v2763_v30  ;;  %2464 = vmatprep.subr.mxu0 %v2927_v20 }
 0x886   :  { %2465 = vmatpush3.msra.mxu0 %v2927_v20  ;;  %2459 = vmatmul.mubr.msk.f32.vlgmr.msra.gmra.mxu1 %vm189_vm2, %v2775_v34 }
 0x887   :  { %2466 = vmatprep.subr.mxu0 %v2929_v21  ;;  %2451 = vmatprep.mubr.msk.f32.mxu0 %vm189_vm2, %v2768_v31 }
 0x888   :  { %2467 = vmatpush3.msra.mxu0 %v2929_v21  ;;  %2461 = vmatprep.mubr.msk.f32.mxu1 %vm189_vm2, %v2787_v36 }
 0x889   :  { %2452 = vmatmul.mubr.msk.f32.gmra.mxu0 %vm189_vm2, %v2782_v35  ;;  %2492 = vmatprep.subr.mxu0 %v2627_v7 }
 0x88a   :  { %2462 = vmatmul.mubr.msk.f32.gmra.mxu1 %vm189_vm2, %v2798_v37  ;;  %2468 = vmatprep.mubr.msk.f32.mxu0 %vm189_vm2, %v2756_v27 }
 0x88b   :  { %2482 = vmatprep.mubr.msk.f32.mxu1 %vm76_vm0, %v2807_v38 }
 0x88d   :  { %2469 = vmatmul.mubr.msk.f32.vlgmr.msra.gmra.mxu0 %vm189_vm2, %v2775_v34 }
 0x88e   :  { %2471 = vmatprep.mubr.msk.f32.mxu0 %vm189_vm2, %v2787_v36 }
 0x891   :  { %2472 = vmatmul.mubr.msk.f32.gmra.mxu0 %vm189_vm2, %v2798_v37 }
 0x892   :  { %2496 = vmatprep.mubr.msk.f32.mxu0 %vm2628_vm4, %v2627_v7 }
 0x945   :  { %v2450_v26 = vpop.f32.mrf.mxu0 }
 0x946   :  { %v2460_v30 = vpop.f32.mrf.mxu1  ;;  %v1552_v2 = vmul.f32 %v2450_v26, %v1343_v8  ;;  %v972_v26 = vsel %vm965_vm5, %v971_v48, 0.0 }
 0x947   :  { %v1532_v31 = vpop.f32.mrf.mxu0 }
 0x948   :  { %v1621_v35 = vpop.f32.mrf.mxu1  ;;  %v1551_v36 = vmul.f32 %v1532_v31, %v1342_v13  ;;  %v1641_v55 = vmul.f32 %v2460_v30, %v1552_v2  ;;  %v1857_v30 = vsel %vm965_vm5, %v1856_v17, 0.0  ;;  %v1869_v31 = vsel %vm965_vm5, %v1868_v0, 0.0  ;;  %v2599_v0 = vld [vmem:[%s3145_s9] sm:$0x1]  ;;  %s2629_s9 = smov [#allocation3]  }
 0x949   :  { %v2453_v49 = vpop.f32.mrf.mxu0  ;;  %s2139_s2 = sshll.u32 %s2629_s9, 4  ;;  %s2140_s2 = int_to_ptr.vmem [resolvable:$true] %s2139_s2 }
 0x94a   :  { %v1554_v50 = vmul.f32 %v2453_v49, %v3011_v4  ;;  %v2463_v27 = vpop.f32.mrf.mxu1  ;;  %v1640_v37 = vmul.f32 %v1621_v35, %v1551_v36  ;;  %s2604_s15 = scalar_lea.vmem %s2140_s2, 16  ;;  %s2608_s16 = scalar_lea.vmem %s2140_s2, 32 }
 0x94b   :  { %v1542_v52 = vpop.f32.mrf.mxu0  ;;  %p2605_p0 = scmp.ne.s32.totalorder %s2140_s2, %s2604_s15  ;;  %p2609_p1 = scmp.lt.s32.totalorder %s2140_s2, %s2140_s2 }
 0x94c   :  { %v1553_v38 = vmul.f32 %v1542_v52, %v3014_v9  ;;  %v1643_v53 = vmul.f32 %v2463_v27, %v1554_v50  ;;  %v1631_v34 = vpop.f32.mrf.mxu1  ;;  %v2590_v9 = vld [vmem:[%s3137_s1 + $0x8] sm:$0xff]  ;;  %p2610_p2 = scmp.lt.s32.totalorder %s2608_s16, %s2604_s15 }
 0x94d   :  { %v2470_v56 = vpop.f32.mrf.mxu0  ;;  %v937_v10 = vadd.f32 %v2590_v9, %v2927_v20  ;;  %v1952_v20 = vld [vmem:[%s3148_s12] sm:$0xf] }
 0x94e   :  { %v1642_v54 = vmul.f32 %v1631_v34, %v1553_v38  ;;  %1746 = vperm.xlu1 %2511, %v1643_v53   ;;  %v2596_v34 = vld [vmem:[%s3141_s5 + $0x10] sm:$0xff]  ;;  %p2611_p3 = por %p2610_p2, %p2609_p1 }
 0x94f   :  { %v1710_v59 = vpop.f32.mrf.mxu0 }
 0x950   :  { %1741 = vperm.xlu0 %2510, %v1642_v54   ;;  %v940_v54 = vmul.f32 %v2596_v34, %v2596_v34  ;;  %p2612_p4 = pnand %p2611_p3, %p2605_p0 }
 0x951   :  { %v2473_v60 = vpop.f32.mrf.mxu0 }
 0x952   :  { %1736 = vperm.xlu1 %2511, %v1641_v55   ;;  %v948_v36 = vsel %vm168_vm1, %v940_v54, 0.0  ;;  %v1830_v55 = vmul.f32 %v2923_v18, %v2923_v18  ;;  %v2598_v18 = vld [vmem:[%s3144_s8] sm:$0x1] }
 0x953   :  { %v1720_v58 = vpop.f32.mrf.mxu0 }
 0x956   :  { %1731 = vperm.xlu1 %2511, %v1640_v37   ;;  %v1834_v37 = vsel %vm168_vm1, %v1830_v55, 0.0 }
 0x96f   :  { %943 = vadd.xlane.f32.xlu0 %v942_v32 }
 0x973   :  { %946 = vadd.xlane.f32.xlu0 %v945_v39 }
 0x977   :  { %952 = vadd.xlane.f32.xlu0 %v951_v42 }
 0x97b   :  { %1838 = vadd.xlane.f32.xlu0 %v1837_v44 }
 0x97f   :  { %1844 = vadd.xlane.f32.xlu0 %v1843_v47 }
 0x983   :  { %973 = vadd.xlane.f32.xlu0 %v972_v26 }
 0x987   :  { %1858 = vadd.xlane.f32.xlu0 %v1857_v30 }
 0x98b   :  { %1870 = vadd.xlane.f32.xlu0 %v1869_v31  ;;  %v983_v31 = vmul.f32 %v2599_v0, %v2599_v0 }
 0x9c9   :  { %v1747_v61 = vpop.permute.xlu1 %1746 }
 0x9ca   :  { %v1752_v62 = vmul.f32 %v2473_v60, %v1747_v61  ;;  %v2597_v60 = vld [vmem:[%s3142_s6] sm:$0x1] }
 0x9cb   :  { %v1742_v19 = vpop.permute.xlu0 %1741  ;;  %v964_v61 = vmul.f32 %v2597_v60, %v2597_v60 }
 0x9cc   :  { %v1751_v63 = vmul.f32 %v1742_v19, %v1720_v58  ;;  %2474 = vmatprep.subr.mxu1 %v1752_v62 }
 0x9cd   :  { %v1737_v3 = vpop.permute.xlu1 %1736  ;;  %2475 = vmatpush3.msra.mxu1 %v1752_v62  ;;  %v966_v58 = vsel %vm965_vm5, %v964_v61, 0.0  ;;  %v977_v62 = vmul.f32 %v2598_v18, %v2598_v18 }
 0x9ce   :  { %v1750_v4 = vmul.f32 %v2470_v56, %v1737_v3  ;;  %2476 = vmatprep.subr.mxu1 %v1751_v63  ;;  %v1832_v56 = vmul.f32 %v2903_v1, %v2903_v1  ;;  %v1862_v1 = vmul.f32 %v2952_v25, %v2952_v25 }
 0x9cf   :  { %2477 = vmatpush3.msra.mxu1 %v1751_v63  ;;  %v978_v19 = vsel %vm965_vm5, %v977_v62, 0.0 }
 0x9d0   :  { %2478 = vmatprep.subr.mxu1 %v1750_v4  ;;  %v1863_v63 = vsel %vm965_vm5, %v1862_v1, 0.0 }
 0x9d1   :  { %v1732_v6 = vpop.permute.xlu1 %1731  ;;  %2479 = vmatpush3.msra.mxu1 %v1750_v4 }
 0x9d2   :  { %v1749_v46 = vmul.f32 %v1732_v6, %v1710_v59  ;;  %v1840_v59 = vsel %vm168_vm1, %v1832_v56, 0.0 }
 0x9d4   :  { %2480 = vmatprep.subr.mxu1 %v1749_v46 }
 0x9d5   :  { %2481 = vmatpush3.msra.mxu1 %v1749_v46 }
 0x9d6   :  { %2483 = vmatmul.mubr.msk.f32.vlgmr.msra.gmra.mxu1 %vm76_vm0, %v2861_v29  ;;  %2485 = vmatprep.subr.mxu1 %v2627_v7  ;;  %v2591_v29 = vld [vmem:[%s3137_s1] sm:$0xff] }
 0x9d7   :  { %2489 = vmatprep.mubr.msk.f32.mxu1 %vm2628_vm4, %v2627_v7  ;;  %v936_v51 = vadd.f32 %v2591_v29, %v2929_v21  ;;  %v2026_v21 = vld [vmem:[%s3149_s13] sm:$0xf] }
 0x9f8   :  { %v944_v3 = vpop.xlane.xlu0 %943 }
 0x9fc   :  { %v947_v4 = vpop.xlane.xlu0 %946 }
 0x9fd   :  { %v954_v9 = vadd.f32 %v947_v4, %v944_v3 }
 0xa00   :  { %v953_v46 = vpop.xlane.xlu0 %952 }
 0xa96   :  { %v2484_v11 = vpop.f32.mrf.mxu1 }
 0xa97   :  { %v1829_v8 = vadd.f32 %v2484_v11, %v937_v10 }
 0xa98   :  { %v1819_v12 = vpop.f32.mrf.mxu1 }
 0xa99   :  { %v1828_v13 = vadd.f32 %v1819_v12, %v936_v51  ;;  %2486 = vmatpush3.msra.mxu1 %v1829_v8  ;;  %2493 = vmatpush3.msra.mxu0 %v1829_v8  ;;  %v1839_v51 = vpop.xlane.xlu0 %1838 }
 0xa9a   :  { %2487 = vmatprep.subr.mxu1 %v2627_v7  ;;  %2494 = vmatprep.subr.mxu0 %v2627_v7 }
 0xa9b   :  { %2488 = vmatpush3.msra.mxu1 %v1828_v13  ;;  %2495 = vmatpush3.msra.mxu0 %v1828_v13 }
 0xa9c   :  { %2490 = vmatmul.mubr.msk.f32.vlgmr.msra.gmra.mxu1 %vm189_vm2, %v1878_v14  ;;  %2499 = vmatprep.subr.mxu1 %v2627_v7 }
 0xa9d   :  { %2500 = vmatpush3.msra.mxu1 %v1829_v8  ;;  %2497 = vmatmul.mubr.msk.f32.vlgmr.msra.gmra.mxu0 %vm189_vm2, %v1952_v20  ;;  %v1845_v15 = vpop.xlane.xlu0 %1844 }
 0xa9e   :  { %2501 = vmatprep.subr.mxu1 %v2627_v7  ;;  %2503 = vmatprep.mubr.msk.f32.mxu1 %vm2628_vm4, %v2627_v7 }
 0xa9f   :  { %2502 = vmatpush3.msra.mxu1 %v1828_v13 }
 0xaa0   :  { %2504 = vmatmul.mubr.msk.f32.vlgmr.msra.gmra.mxu1 %vm189_vm2, %v2026_v21 }
 0xaa1   :  { %v974_v45 = vpop.xlane.xlu0 %973 }
 0xb5c   :  { %v1948_v35 = vpop.f32.mrf.mxu1 }
 0xb5d   :  { %v2022_v49 = vpop.f32.mrf.mxu0 }
 0xb5e   :  { %v2491_v50 = vpop.f32.mrf.mxu1  ;;  %v2100_v2 = vmul.f32 %v2022_v49, %v1948_v35 }
 0xb5f   :  { %v2498_v27 = vpop.f32.mrf.mxu0 }
 0xb60   :  { %v2096_v52 = vpop.f32.mrf.mxu1 }
 0xb61   :  { %v2101_v38 = vmul.f32 %v2096_v52, %v1948_v35 }
 0xb62   :  { %v2505_v53 = vpop.f32.mrf.mxu1 }
 0xb63   :  { %v2102_v22 = vsub.f32 %v2100_v2, %v2101_v38  ;;  %v1859_v38 = vpop.xlane.xlu0 %1858 }
 0xb65   :  { %v2104_v24 = vsel %vm2103_vm6, %v2102_v22, 0.0 }
 0xb66   :  { %2105 = vadd.xlane.f32.xlu1 %v2104_v24 }
 0xb6a   :  { %949 = vadd.xlane.f32.xlu1 %v948_v36 }
 0xb6e   :  { %1835 = vadd.xlane.f32.xlu1 %v1834_v37 }
 0xb72   :  { %1841 = vadd.xlane.f32.xlu1 %v1840_v59  ;;  %v1871_v59 = vpop.xlane.xlu0 %1870 }
 0xb76   :  { %967 = vadd.xlane.f32.xlu1 %v966_v58  ;;  %v1874_v58 = vmul.f32 %v2981_v57, %v2981_v57 }
 0xb7a   :  { %979 = vadd.xlane.f32.xlu1 %v978_v19 }
 0xb7e   :  { %1864 = vadd.xlane.f32.xlu1 %v1863_v63 }
 0xbef   :  { %v2106_v6 = vpop.xlane.xlu1 %2105 }
 0xbf0   :  { %v2109_v7 = vand.u32 2147483647, %v2106_v6  ;;  %v2107_v52 = vsub.f32 0.0, %v2106_v6 }
 0xbf2   :  { %v2110_v10 = vsub.f32 0.0, %v2109_v7  ;;  %v2108_v22 = vmax.f32 %v2107_v52, 0.0 }
 0xbf3   :  { %v950_v11 = vpop.xlane.xlu1 %949 }
 0xbf4   :  { %v2111_v8 = vmul.f32 1.442695, %v2110_v10  ;;  %v955_v29 = vadd.f32 %v954_v9, %v950_v11 }
 0xbf6   :  { %2586 = vpow2.f32 %v2111_v8  ;;  %v956_v12 = vadd.f32 %v955_v29, %v953_v46  ;;  %v2129_v46 = vmul.f32 0.0001, %v3023_v33 }
 0xbf7   :  { %v1836_v13 = vpop.xlane.xlu1 %1835 }
 0xbf8   :  { %v957_v14 = vrot.slane %v956_v12, 4  ;;  %v1846_v25 = vadd.f32 %v1839_v51, %v1836_v13 }
 0xbfa   :  { %v958_v20 = vadd.f32 %v957_v14, %v956_v12 }
 0xbfb   :  { %v1842_v21 = vpop.xlane.xlu1 %1841 }
 0xbfc   :  { %v959_v16 = vrot.slane %v958_v20, 2  ;;  %v1847_v23 = vadd.f32 %v1846_v25, %v1842_v21 }
 0xbfe   :  { %v1848_v28 = vadd.f32 %v1847_v23, %v1845_v15  ;;  %v960_v32 = vadd.f32 %v959_v16, %v958_v20 }
 0xbff   :  { %v968_v41 = vpop.xlane.xlu1 %967 }
 0xc00   :  { %v1849_v39 = vrot.slane %v1848_v28, 4  ;;  %v961_v40 = vrot.slane %v960_v32, 1 }
 0xc02   :  { %v1850_v42 = vadd.f32 %v1849_v39, %v1848_v28  ;;  %v962_v43 = vadd.f32 %v961_v40, %v960_v32 }
 0xc03   :  { %v2587_v44 = vpop.eup %2586  ;;  %v980_v30 = vpop.xlane.xlu1 %979 }
 0xc04   :  { %v2113_v47 = vadd.f32 1.0, %v2587_v44  ;;  %v1851_v5 = vrot.slane %v1850_v42, 2  ;;  %v970_v48 = vadd.f32 %v968_v41, %v962_v43 }
 0xc06   :  { %2588 = vlog2.f32 %v2113_v47  ;;  %v1852_v26 = vadd.f32 %v1851_v5, %v1850_v42  ;;  %v976_v17 = vadd.f32 %v974_v45, %v970_v48 }
 0xc07   :  { %v1865_v36 = vpop.xlane.xlu1 %1864 }
 0xc08   :  { %v982_v35 = vadd.f32 %v980_v30, %v976_v17  ;;  %v1853_v49 = vrot.slane %v1852_v26, 1 }
 0xc0a   :  { %v986_v50 = vadd.f32 %v983_v31, %v982_v35  ;;  %v1854_v27 = vadd.f32 %v1853_v49, %v1852_v26 }
 0xc0c   :  { %v1855_v2 = vadd.f32 %v1854_v27, %v986_v50 }
 0xc0e   :  { %v1861_v54 = vadd.f32 %v1859_v38, %v1855_v2 }
 0xc10   :  { %v1867_v56 = vadd.f32 %v1865_v36, %v1861_v54 }
 0xc12   :  { %v1873_v18 = vadd.f32 %v1871_v59, %v1867_v56 }
 0xc13   :  { %v2589_v53 = vpop.eup %2588 }
 0xc14   :  { %v2115_v34 = vmul.f32 0.6931472, %v2589_v53  ;;  %v1877_v19 = vadd.f32 %v1874_v58, %v1873_v18 }
 0xc16   :  { %v2116_v24 = vadd.f32 %v2115_v34, %v2108_v22  ;;  %v2127_v4 = vmul.f32 1e-05, %v1877_v19 }
 0xc18   :  { %v2118_v55 = vsel %vm2117_vm7, %v2116_v24, 0.0 }
 0xc19   :  { %v2119_v37 = vrot.slane %v2118_v55, 4 }
 0xc1b   :  { %v2120_v60 = vadd.f32 %v2119_v37, %v2118_v55 }
 0xc1d   :  { %v2121_v61 = vrot.slane %v2120_v60, 2 }
 0xc1f   :  { %v2122_v62 = vadd.f32 %v2121_v61, %v2120_v60 }
 0xc21   :  { %v2123_v1 = vrot.slane %v2122_v62, 1 }
 0xc23   :  { %v2124_v63 = vadd.f32 %v2123_v1, %v2122_v62 }
 0xc25   :  { %v2126_v3 = vmul.f32 0.25, %v2124_v63 }
 0xc27   :  { %v2128_v6 = vadd.f32 %v2127_v4, %v2126_v3 }
 0xc29   :  { %v2130_v7 = vadd.f32 %v2129_v46, %v2128_v6 }
 0xc2b   :  { %2132 = vst.msk [vmem:[#allocation3] sm:$0x1] %vm2131_vm8, %v2130_v7 }
 0xc2c   :  { %2615 = shalt.err (!%p2612_p4)
}
 0xc2d   :  { %2142 = dma.vmem_to_hbm [thread:$0]  %s2140_s2, 16, %s3150_s14, [#allocation4]  }
 0xc2e   :  { %2624 = dma.done.wait [#allocation4], 16  }
 0xc2f   :  { %2625 = vsyncadd [#allocation4], 4294967280 }
 0xc30   :  { %2146 = vsyncpa [#allocation4], 1 }

</bundles_post_ra>
